<compile_context>
chip_gen: v7x
topology: tpu7x:2x2x1
jax: 0.10.0
libtpu: 0.0.40
codegen_flags: <defaults>
</compile_context>

<pallas_src>
import functools

import jax
import jax.numpy as jnp
from jax.experimental import pallas as pl
from jax.experimental.pallas import tpu as pltpu


def _csa_kernel(x_ref, wqkv_ref, bqkv_ref, wo_ref, bo_ref, bias_ref,
                oh_ref, ohT_ref, gamma_ref, beta_ref, y_ref, *, num_heads, eps):
    """Fused MHA (rows grouped into length-L sequences) + train-mode BN.

    Layout: all activations are 2-D with the embed dim E on the lane axis and
    all B*T*C tokens stacked on the sublane axis (NL rows). Sequence structure
    is enforced with an additive block-diagonal bias instead of 3-D
    reshape/transpose (which would force relayouts at these tiny shapes).
    """
    x = x_ref[...].astype(jnp.float32)            # (NL, E)
    NL, E = x.shape
    L = gamma_ref.shape[0]
    H = num_heads
    dh = E // H

    # --- fused Q/K/V projection: one (NL, E) @ (E, 3E) matmul ---------------
    qkv = jnp.dot(x, wqkv_ref[...], preferred_element_type=jnp.float32) + bqkv_ref[...]
    bias = bias_ref[...]                          # (NL, NL): 0 in-sequence, -1e30 off

    # --- attention, batched over all sequences (block-diagonal masking) -----
    heads = []
    for h in range(H):                            # static unroll, H is small
        qh = qkv[:, h * dh:(h + 1) * dh]          # (NL, dh); 1/sqrt(dh) folded into Wq
        kh = qkv[:, E + h * dh:E + (h + 1) * dh]
        vh = qkv[:, 2 * E + h * dh:2 * E + (h + 1) * dh]
        # s[a, b] = <q_a, k_b>  ("NT" matmul, no explicit transpose)
        s = jax.lax.dot_general(qh, kh, (((1,), (1,)), ((), ())),
                                preferred_element_type=jnp.float32)   # (NL, NL)
        s = s + bias
        s = s - jnp.max(s, axis=-1, keepdims=True)
        p = jnp.exp(s)                            # off-sequence entries underflow to 0
        p = p * pl.reciprocal(jnp.sum(p, axis=-1, keepdims=True), approx=True)
        heads.append(jnp.dot(p, vh, preferred_element_type=jnp.float32))   # (NL, dh)
    attn = jnp.concatenate(heads, axis=-1)        # (NL, E)

    # --- output projection ---------------------------------------------------
    y = jnp.dot(attn, wo_ref[...], preferred_element_type=jnp.float32) + bo_ref[...]

    # --- train-mode BatchNorm1d over channel c = (row index mod L) ----------
    oh = oh_ref[...]                              # (L, NL) one-hot channel selector
    ohT = ohT_ref[...]                            # (NL, L)
    count = (NL // L) * E                         # N * E elements per channel (static)
    s1 = jnp.dot(oh, y, preferred_element_type=jnp.float32)         # (L, E)
    s2 = jnp.dot(oh, y * y, preferred_element_type=jnp.float32)     # (L, E)
    mean_c = jnp.sum(s1, axis=1, keepdims=True) * (1.0 / count)     # (L, 1)
    ex2_c = jnp.sum(s2, axis=1, keepdims=True) * (1.0 / count)      # (L, 1)
    var_c = ex2_c - mean_c * mean_c               # biased variance (train mode)
    inv_c = jax.lax.rsqrt(var_c + eps)
    scale_c = gamma_ref[...] * inv_c              # (L, 1)
    shift_c = beta_ref[...] - mean_c * scale_c    # (L, 1)
    scale_r = jnp.dot(ohT, scale_c, preferred_element_type=jnp.float32)  # (NL, 1)
    shift_r = jnp.dot(ohT, shift_c, preferred_element_type=jnp.float32)  # (NL, 1)
    y_ref[...] = (y * scale_r + shift_r).astype(y_ref.dtype)


def prepare_params(params, num_heads):
    """One-time parameter preprocessing (kept outside the per-call hot path)."""
    E = params["wq"].shape[0]
    dh = E // num_heads
    scale = 1.0 / (dh ** 0.5)
    wqkv_t = jnp.concatenate(
        [params["wq"].T * scale, params["wk"].T, params["wv"].T], axis=1)      # (E, 3E)
    bqkv = jnp.concatenate(
        [params["bq"] * scale, params["bk"], params["bv"]]).reshape(1, 3 * E)  # (1, 3E)
    return {
        "wqkvT": wqkv_t,
        "bqkv": bqkv,
        "woT": params["wo"].T,                    # (E, E)
        "bo": params["bo"].reshape(1, E),
        "gamma": params["gamma"].reshape(-1, 1),  # (L, 1)
        "beta": params["beta"].reshape(-1, 1),
    }


@functools.partial(jax.jit, static_argnames=("num_heads", "eps"))
def csa_block(x, prep, *, num_heads, eps=1e-5):
    B, C, T, Fdim = x.shape
    N, L, E = B * T, C, Fdim
    NL = N * L

    # glue: (B, C, T, F) -> (B, T, C, F) -> (B*T*C, F); one small XLA copy.
    x2d = jnp.transpose(x, (0, 2, 1, 3)).reshape(NL, E)

    # Compile-time constants (depend only on static shapes; folded under jit).
    seq_id = jnp.repeat(jnp.arange(N, dtype=jnp.int32), L)            # (NL,)
    attn_bias = jnp.where(seq_id[:, None] == seq_id[None, :],
                          0.0, -1e30).astype(jnp.float32)             # (NL, NL)
    ch_id = jnp.tile(jnp.arange(L, dtype=jnp.int32), N)               # (NL,)
    onehot = (jnp.arange(L, dtype=jnp.int32)[:, None] == ch_id[None, :]
              ).astype(jnp.float32)                                   # (L, NL)
    onehot_t = onehot.T                                               # (NL, L)

    # Single fused pallas_call, one grid step, everything resident in VMEM
    # (~60 KiB total here -> trivially fine on v5e/v6e/v7x).
    # TODO(synk): tile over sequences (grid over N, "parallel" for megacore)
    # and stream the BN statistics if B*T*C*F ever approaches the VMEM budget.
    vmem = pl.BlockSpec(memory_space=pltpu.MemorySpace.VMEM)
    y2d = pl.pallas_call(
        functools.partial(_csa_kernel, num_heads=num_heads, eps=eps),
        out_shape=jax.ShapeDtypeStruct((NL, E), x.dtype),
        in_specs=[vmem] * 10,
        out_specs=vmem,
    )(x2d, prep["wqkvT"], prep["bqkv"], prep["woT"], prep["bo"],
      attn_bias, onehot, onehot_t, prep["gamma"], prep["beta"])

    # glue back: (B*T*C, F) -> (B, T, C, F) -> (B, C, T, F)
    return jnp.transpose(y2d.reshape(B, T, C, Fdim), (0, 2, 1, 3))


def csa_block_reference(x, params, num_heads, eps=1e-5):
    """Pure-JAX reference mirroring PyTorch CSABlock.forward (train-mode BN)."""
    B, C, T, Fdim = x.shape
    N, L, E = B * T, C, Fdim
    dh = E // num_heads
    xs = jnp.transpose(x, (0, 2, 1, 3)).reshape(N, L, E)
    q = (xs @ params["wq"].T + params["bq"]) / jnp.sqrt(dh)
    k = xs @ params["wk"].T + params["bk"]
    v = xs @ params["wv"].T + params["bv"]
    q = q.reshape(N, L, num_heads, dh).transpose(0, 2, 1, 3)
    k = k.reshape(N, L, num_heads, dh).transpose(0, 2, 1, 3)
    v = v.reshape(N, L, num_heads, dh).transpose(0, 2, 1, 3)
    s = jnp.einsum("nhld,nhmd->nhlm", q, k)
    p = jax.nn.softmax(s, axis=-1)
    o = jnp.einsum("nhlm,nhmd->nhld", p, v).transpose(0, 2, 1, 3).reshape(N, L, E)
    y = o @ params["wo"].T + params["bo"]
    mean = y.mean(axis=(0, 2), keepdims=True)
    var = y.var(axis=(0, 2), keepdims=True)               # biased, like PyTorch train
    y = (y - mean) / jnp.sqrt(var + eps)
    y = y * params["gamma"][None, :, None] + params["beta"][None, :, None]
    return jnp.transpose(y.reshape(B, T, C, Fdim), (0, 2, 1, 3))


if __name__ == "__main__":
    # Module hyper-params: in_channels = F = 32, hidden_size (num_heads) = 4,
    # out_channels = C = 4 (BatchNorm1d channels).
    B, C, T, Fdim = 2, 4, 8, 32
    num_heads = 4
    E = Fdim

    key = jax.random.PRNGKey(0)
    ks = jax.random.split(key, 11)
    s = 0.1
    params = {
        "wq": jax.random.normal(ks[0], (E, E), jnp.float32) * s,
        "wk": jax.random.normal(ks[1], (E, E), jnp.float32) * s,
        "wv": jax.random.normal(ks[2], (E, E), jnp.float32) * s,
        "wo": jax.random.normal(ks[3], (E, E), jnp.float32) * s,
        "bq": jax.random.normal(ks[4], (E,), jnp.float32) * s,
        "bk": jax.random.normal(ks[5], (E,), jnp.float32) * s,
        "bv": jax.random.normal(ks[6], (E,), jnp.float32) * s,
        "bo": jax.random.normal(ks[7], (E,), jnp.float32) * s,
        "gamma": 1.0 + jax.random.normal(ks[8], (C,), jnp.float32) * s,
        "beta": jax.random.normal(ks[9], (C,), jnp.float32) * s,
    }
    x = jax.random.normal(ks[10], (B, C, T, Fdim), jnp.float32)

    prep = prepare_params(params, num_heads)      # one-time setup, not hot path
    out = jax.block_until_ready(csa_block(x, prep, num_heads=num_heads, eps=1e-5))
    assert out.shape == (B, C, T, Fdim), out.shape

    ref = csa_block_reference(x, params, num_heads)
    err = float(jnp.max(jnp.abs(out - ref)))
    if not err < 5e-2:
        raise SystemExit(f"mismatch vs reference: max abs err = {err}")

    print("KERNEL_OK")
</pallas_src>

<mosaic_0001>
module attributes {stable_mosaic.version = 11 : i64} {
  func.func @_csa_kernel(%arg0: memref<64x32xf32, #tpu.memory_space<vmem>>, %arg1: memref<32x96xf32, #tpu.memory_space<vmem>>, %arg2: memref<1x96xf32, #tpu.memory_space<vmem>>, %arg3: memref<32x32xf32, #tpu.memory_space<vmem>>, %arg4: memref<1x32xf32, #tpu.memory_space<vmem>>, %arg5: memref<64x64xf32, #tpu.memory_space<vmem>>, %arg6: memref<4x64xf32, #tpu.memory_space<vmem>>, %arg7: memref<64x4xf32, #tpu.memory_space<vmem>>, %arg8: memref<4x1xf32, #tpu.memory_space<vmem>>, %arg9: memref<4x1xf32, #tpu.memory_space<vmem>>, %arg10: memref<64x32xf32, #tpu.memory_space<vmem>>) attributes {dimension_semantics = [], scalar_prefetch = 0 : i64, scratch_operands = 0 : i64, tpu.core_type = #tpu.core_type<tc>} {
    %c0 = arith.constant 0 : index
    %c0_0 = arith.constant 0 : index
    %0 = vector.load %arg0[%c0, %c0_0] : memref<64x32xf32, #tpu.memory_space<vmem>>, vector<64x32xf32>
    %c0_1 = arith.constant 0 : index
    %c0_2 = arith.constant 0 : index
    %1 = vector.load %arg1[%c0_1, %c0_2] : memref<32x96xf32, #tpu.memory_space<vmem>>, vector<32x96xf32>
    %cst = arith.constant dense<0.000000e+00> : vector<64x96xf32>
    %2 = tpu.matmul %0, %1, %cst {dimension_numbers = #tpu.dot_dimension_numbers<[1], [0], [0], [1], [0, 0, 1, 1], [], []>} : vector<64x32xf32>, vector<32x96xf32>, vector<64x96xf32> -> vector<64x96xf32>
    %c0_3 = arith.constant 0 : index
    %c0_4 = arith.constant 0 : index
    %3 = vector.load %arg2[%c0_3, %c0_4] : memref<1x96xf32, #tpu.memory_space<vmem>>, vector<1x96xf32>
    %4 = vector.broadcast %3 : vector<1x96xf32> to vector<64x96xf32>
    %5 = arith.addf %2, %4 : vector<64x96xf32>
    %c0_5 = arith.constant 0 : index
    %c0_6 = arith.constant 0 : index
    %6 = vector.load %arg5[%c0_5, %c0_6] : memref<64x64xf32, #tpu.memory_space<vmem>>, vector<64x64xf32>
    %7 = vector.extract_strided_slice %5 {offsets = [0, 0], sizes = [64, 8], strides = [1, 1]} : vector<64x96xf32> to vector<64x8xf32>
    %8 = vector.extract_strided_slice %5 {offsets = [0, 32], sizes = [64, 8], strides = [1, 1]} : vector<64x96xf32> to vector<64x8xf32>
    %9 = vector.extract_strided_slice %5 {offsets = [0, 64], sizes = [64, 8], strides = [1, 1]} : vector<64x96xf32> to vector<64x8xf32>
    %cst_7 = arith.constant dense<0.000000e+00> : vector<64x64xf32>
    %10 = tpu.matmul %7, %8, %cst_7 {dimension_numbers = #tpu.dot_dimension_numbers<[1], [1], [0], [0], [0, 0, 1, 0], [], []>} : vector<64x8xf32>, vector<64x8xf32>, vector<64x64xf32> -> vector<64x64xf32>
    %11 = arith.addf %10, %6 : vector<64x64xf32>
    %cst_8 = arith.constant dense<0xFF800000> : vector<64xf32>
    %12 = vector.multi_reduction <maximumf>, %11, %cst_8 [1] : vector<64x64xf32> to vector<64xf32>
    %13 = vector.shape_cast %12 : vector<64xf32> to vector<64x1xf32>
    %14 = vector.broadcast %13 : vector<64x1xf32> to vector<64x64xf32>
    %15 = arith.subf %11, %14 : vector<64x64xf32>
    %16 = math.exp %15 : vector<64x64xf32>
    %cst_9 = arith.constant dense<0.000000e+00> : vector<64xf32>
    %17 = vector.multi_reduction <add>, %16, %cst_9 [1] : vector<64x64xf32> to vector<64xf32>
    %18 = vector.shape_cast %17 : vector<64xf32> to vector<64x1xf32>
    %19 = tpu.reciprocal %18 {approx = true} : vector<64x1xf32> -> vector<64x1xf32>
    %20 = vector.broadcast %19 : vector<64x1xf32> to vector<64x64xf32>
    %21 = arith.mulf %16, %20 : vector<64x64xf32>
    %cst_10 = arith.constant dense<0.000000e+00> : vector<64x8xf32>
    %22 = tpu.matmul %21, %9, %cst_10 {dimension_numbers = #tpu.dot_dimension_numbers<[1], [0], [0], [1], [0, 0, 1, 1], [], []>} : vector<64x64xf32>, vector<64x8xf32>, vector<64x8xf32> -> vector<64x8xf32>
    %23 = vector.extract_strided_slice %5 {offsets = [0, 8], sizes = [64, 8], strides = [1, 1]} : vector<64x96xf32> to vector<64x8xf32>
    %24 = vector.extract_strided_slice %5 {offsets = [0, 40], sizes = [64, 8], strides = [1, 1]} : vector<64x96xf32> to vector<64x8xf32>
    %25 = vector.extract_strided_slice %5 {offsets = [0, 72], sizes = [64, 8], strides = [1, 1]} : vector<64x96xf32> to vector<64x8xf32>
    %cst_11 = arith.constant dense<0.000000e+00> : vector<64x64xf32>
    %26 = tpu.matmul %23, %24, %cst_11 {dimension_numbers = #tpu.dot_dimension_numbers<[1], [1], [0], [0], [0, 0, 1, 0], [], []>} : vector<64x8xf32>, vector<64x8xf32>, vector<64x64xf32> -> vector<64x64xf32>
    %27 = arith.addf %26, %6 : vector<64x64xf32>
    %cst_12 = arith.constant dense<0xFF800000> : vector<64xf32>
    %28 = vector.multi_reduction <maximumf>, %27, %cst_12 [1] : vector<64x64xf32> to vector<64xf32>
    %29 = vector.shape_cast %28 : vector<64xf32> to vector<64x1xf32>
    %30 = vector.broadcast %29 : vector<64x1xf32> to vector<64x64xf32>
    %31 = arith.subf %27, %30 : vector<64x64xf32>
    %32 = math.exp %31 : vector<64x64xf32>
    %cst_13 = arith.constant dense<0.000000e+00> : vector<64xf32>
    %33 = vector.multi_reduction <add>, %32, %cst_13 [1] : vector<64x64xf32> to vector<64xf32>
    %34 = vector.shape_cast %33 : vector<64xf32> to vector<64x1xf32>
    %35 = tpu.reciprocal %34 {approx = true} : vector<64x1xf32> -> vector<64x1xf32>
    %36 = vector.broadcast %35 : vector<64x1xf32> to vector<64x64xf32>
    %37 = arith.mulf %32, %36 : vector<64x64xf32>
    %cst_14 = arith.constant dense<0.000000e+00> : vector<64x8xf32>
    %38 = tpu.matmul %37, %25, %cst_14 {dimension_numbers = #tpu.dot_dimension_numbers<[1], [0], [0], [1], [0, 0, 1, 1], [], []>} : vector<64x64xf32>, vector<64x8xf32>, vector<64x8xf32> -> vector<64x8xf32>
    %39 = vector.extract_strided_slice %5 {offsets = [0, 16], sizes = [64, 8], strides = [1, 1]} : vector<64x96xf32> to vector<64x8xf32>
    %40 = vector.extract_strided_slice %5 {offsets = [0, 48], sizes = [64, 8], strides = [1, 1]} : vector<64x96xf32> to vector<64x8xf32>
    %41 = vector.extract_strided_slice %5 {offsets = [0, 80], sizes = [64, 8], strides = [1, 1]} : vector<64x96xf32> to vector<64x8xf32>
    %cst_15 = arith.constant dense<0.000000e+00> : vector<64x64xf32>
    %42 = tpu.matmul %39, %40, %cst_15 {dimension_numbers = #tpu.dot_dimension_numbers<[1], [1], [0], [0], [0, 0, 1, 0], [], []>} : vector<64x8xf32>, vector<64x8xf32>, vector<64x64xf32> -> vector<64x64xf32>
    %43 = arith.addf %42, %6 : vector<64x64xf32>
    %cst_16 = arith.constant dense<0xFF800000> : vector<64xf32>
    %44 = vector.multi_reduction <maximumf>, %43, %cst_16 [1] : vector<64x64xf32> to vector<64xf32>
    %45 = vector.shape_cast %44 : vector<64xf32> to vector<64x1xf32>
    %46 = vector.broadcast %45 : vector<64x1xf32> to vector<64x64xf32>
    %47 = arith.subf %43, %46 : vector<64x64xf32>
    %48 = math.exp %47 : vector<64x64xf32>
    %cst_17 = arith.constant dense<0.000000e+00> : vector<64xf32>
    %49 = vector.multi_reduction <add>, %48, %cst_17 [1] : vector<64x64xf32> to vector<64xf32>
    %50 = vector.shape_cast %49 : vector<64xf32> to vector<64x1xf32>
    %51 = tpu.reciprocal %50 {approx = true} : vector<64x1xf32> -> vector<64x1xf32>
    %52 = vector.broadcast %51 : vector<64x1xf32> to vector<64x64xf32>
    %53 = arith.mulf %48, %52 : vector<64x64xf32>
    %cst_18 = arith.constant dense<0.000000e+00> : vector<64x8xf32>
    %54 = tpu.matmul %53, %41, %cst_18 {dimension_numbers = #tpu.dot_dimension_numbers<[1], [0], [0], [1], [0, 0, 1, 1], [], []>} : vector<64x64xf32>, vector<64x8xf32>, vector<64x8xf32> -> vector<64x8xf32>
    %55 = vector.extract_strided_slice %5 {offsets = [0, 24], sizes = [64, 8], strides = [1, 1]} : vector<64x96xf32> to vector<64x8xf32>
    %56 = vector.extract_strided_slice %5 {offsets = [0, 56], sizes = [64, 8], strides = [1, 1]} : vector<64x96xf32> to vector<64x8xf32>
    %57 = vector.extract_strided_slice %5 {offsets = [0, 88], sizes = [64, 8], strides = [1, 1]} : vector<64x96xf32> to vector<64x8xf32>
    %cst_19 = arith.constant dense<0.000000e+00> : vector<64x64xf32>
    %58 = tpu.matmul %55, %56, %cst_19 {dimension_numbers = #tpu.dot_dimension_numbers<[1], [1], [0], [0], [0, 0, 1, 0], [], []>} : vector<64x8xf32>, vector<64x8xf32>, vector<64x64xf32> -> vector<64x64xf32>
    %59 = arith.addf %58, %6 : vector<64x64xf32>
    %cst_20 = arith.constant dense<0xFF800000> : vector<64xf32>
    %60 = vector.multi_reduction <maximumf>, %59, %cst_20 [1] : vector<64x64xf32> to vector<64xf32>
    %61 = vector.shape_cast %60 : vector<64xf32> to vector<64x1xf32>
    %62 = vector.broadcast %61 : vector<64x1xf32> to vector<64x64xf32>
    %63 = arith.subf %59, %62 : vector<64x64xf32>
    %64 = math.exp %63 : vector<64x64xf32>
    %cst_21 = arith.constant dense<0.000000e+00> : vector<64xf32>
    %65 = vector.multi_reduction <add>, %64, %cst_21 [1] : vector<64x64xf32> to vector<64xf32>
    %66 = vector.shape_cast %65 : vector<64xf32> to vector<64x1xf32>
    %67 = tpu.reciprocal %66 {approx = true} : vector<64x1xf32> -> vector<64x1xf32>
    %68 = vector.broadcast %67 : vector<64x1xf32> to vector<64x64xf32>
    %69 = arith.mulf %64, %68 : vector<64x64xf32>
    %cst_22 = arith.constant dense<0.000000e+00> : vector<64x8xf32>
    %70 = tpu.matmul %69, %57, %cst_22 {dimension_numbers = #tpu.dot_dimension_numbers<[1], [0], [0], [1], [0, 0, 1, 1], [], []>} : vector<64x64xf32>, vector<64x8xf32>, vector<64x8xf32> -> vector<64x8xf32>
    %71 = tpu.concatenate %22, %38, %54, %70 in 1 : vector<64x8xf32>, vector<64x8xf32>, vector<64x8xf32>, vector<64x8xf32> -> vector<64x32xf32>
    %c0_23 = arith.constant 0 : index
    %c0_24 = arith.constant 0 : index
    %72 = vector.load %arg3[%c0_23, %c0_24] : memref<32x32xf32, #tpu.memory_space<vmem>>, vector<32x32xf32>
    %cst_25 = arith.constant dense<0.000000e+00> : vector<64x32xf32>
    %73 = tpu.matmul %71, %72, %cst_25 {dimension_numbers = #tpu.dot_dimension_numbers<[1], [0], [0], [1], [0, 0, 1, 1], [], []>} : vector<64x32xf32>, vector<32x32xf32>, vector<64x32xf32> -> vector<64x32xf32>
    %c0_26 = arith.constant 0 : index
    %c0_27 = arith.constant 0 : index
    %74 = vector.load %arg4[%c0_26, %c0_27] : memref<1x32xf32, #tpu.memory_space<vmem>>, vector<1x32xf32>
    %75 = vector.broadcast %74 : vector<1x32xf32> to vector<64x32xf32>
    %76 = arith.addf %73, %75 : vector<64x32xf32>
    %c0_28 = arith.constant 0 : index
    %c0_29 = arith.constant 0 : index
    %77 = vector.load %arg6[%c0_28, %c0_29] : memref<4x64xf32, #tpu.memory_space<vmem>>, vector<4x64xf32>
    %c0_30 = arith.constant 0 : index
    %c0_31 = arith.constant 0 : index
    %78 = vector.load %arg7[%c0_30, %c0_31] : memref<64x4xf32, #tpu.memory_space<vmem>>, vector<64x4xf32>
    %cst_32 = arith.constant dense<0.000000e+00> : vector<4x32xf32>
    %79 = tpu.matmul %77, %76, %cst_32 {dimension_numbers = #tpu.dot_dimension_numbers<[1], [0], [0], [1], [0, 0, 1, 1], [], []>} : vector<4x64xf32>, vector<64x32xf32>, vector<4x32xf32> -> vector<4x32xf32>
    %80 = arith.mulf %76, %76 : vector<64x32xf32>
    %cst_33 = arith.constant dense<0.000000e+00> : vector<4x32xf32>
    %81 = tpu.matmul %77, %80, %cst_33 {dimension_numbers = #tpu.dot_dimension_numbers<[1], [0], [0], [1], [0, 0, 1, 1], [], []>} : vector<4x64xf32>, vector<64x32xf32>, vector<4x32xf32> -> vector<4x32xf32>
    %cst_34 = arith.constant dense<0.000000e+00> : vector<4xf32>
    %82 = vector.multi_reduction <add>, %79, %cst_34 [1] : vector<4x32xf32> to vector<4xf32>
    %83 = vector.shape_cast %82 : vector<4xf32> to vector<4x1xf32>
    %cst_35 = arith.constant 0.001953125 : f32
    %84 = vector.broadcast %cst_35 : f32 to vector<4x1xf32>
    %85 = arith.mulf %83, %84 : vector<4x1xf32>
    %cst_36 = arith.constant dense<0.000000e+00> : vector<4xf32>
    %86 = vector.multi_reduction <add>, %81, %cst_36 [1] : vector<4x32xf32> to vector<4xf32>
    %87 = vector.shape_cast %86 : vector<4xf32> to vector<4x1xf32>
    %cst_37 = arith.constant 0.001953125 : f32
    %88 = vector.broadcast %cst_37 : f32 to vector<4x1xf32>
    %89 = arith.mulf %87, %88 : vector<4x1xf32>
    %90 = arith.mulf %85, %85 : vector<4x1xf32>
    %91 = arith.subf %89, %90 : vector<4x1xf32>
    %cst_38 = arith.constant 9.99999974E-6 : f32
    %92 = vector.broadcast %cst_38 : f32 to vector<4x1xf32>
    %93 = arith.addf %91, %92 : vector<4x1xf32>
    %94 = math.rsqrt %93 : vector<4x1xf32>
    %c0_39 = arith.constant 0 : index
    %c0_40 = arith.constant 0 : index
    %95 = vector.load %arg8[%c0_39, %c0_40] : memref<4x1xf32, #tpu.memory_space<vmem>>, vector<4x1xf32>
    %96 = arith.mulf %95, %94 : vector<4x1xf32>
    %c0_41 = arith.constant 0 : index
    %c0_42 = arith.constant 0 : index
    %97 = vector.load %arg9[%c0_41, %c0_42] : memref<4x1xf32, #tpu.memory_space<vmem>>, vector<4x1xf32>
    %98 = arith.mulf %85, %96 : vector<4x1xf32>
    %99 = arith.subf %97, %98 : vector<4x1xf32>
    %cst_43 = arith.constant dense<0.000000e+00> : vector<64x1xf32>
    %100 = tpu.matmul %78, %96, %cst_43 {dimension_numbers = #tpu.dot_dimension_numbers<[1], [0], [0], [1], [0, 0, 1, 1], [], []>} : vector<64x4xf32>, vector<4x1xf32>, vector<64x1xf32> -> vector<64x1xf32>
    %cst_44 = arith.constant dense<0.000000e+00> : vector<64x1xf32>
    %101 = tpu.matmul %78, %99, %cst_44 {dimension_numbers = #tpu.dot_dimension_numbers<[1], [0], [0], [1], [0, 0, 1, 1], [], []>} : vector<64x4xf32>, vector<4x1xf32>, vector<64x1xf32> -> vector<64x1xf32>
    %102 = vector.broadcast %100 : vector<64x1xf32> to vector<64x32xf32>
    %103 = arith.mulf %76, %102 : vector<64x32xf32>
    %104 = vector.broadcast %101 : vector<64x1xf32> to vector<64x32xf32>
    %105 = arith.addf %103, %104 : vector<64x32xf32>
    %c0_45 = arith.constant 0 : index
    %c0_46 = arith.constant 0 : index
    %106 = vector.load %arg10[%c0_45, %c0_46] : memref<64x32xf32, #tpu.memory_space<vmem>>, vector<64x32xf32>
    tpu.vector_store %arg10[%c0_45, %c0_46], %105 {strides = array<i32>} : memref<64x32xf32, #tpu.memory_space<vmem>>, vector<64x32xf32>,
    return
  }
}

</mosaic_0001>

<bundles_post_ra>
// kernel: eq.25
= control target key start
LH: loop header
LB: loop body
LE: loop exit
PB: predicated region body
PF: predicated region fallthrough
CT: control target
= control target key end

     0   :  { %s131_s10 = smov 60   ;;  %s132_s11 = smov 52   ;;  %vm3_vm0 = vcmask 31744   ;;  %vm9_vm1 = vcmask 523744   ;;  %vm15_vm2 = vcmask 490944   ;;  %vm21_vm3 = vcmask 458144   ;;  %s207_s0 = inlined_call_operand.vmem [shape: s32[16,4], index: 0, kind: input, shape index: {}]   ;;  %s208_s1 = inlined_call_operand.vmem [shape: s32[64], index: 1, kind: output, shape index: {}]  }
   0x1   :  { %v101_v0 = vld [vmem:[%s207_s0 + $0xf] sm:$0x1]   ;;  %v103_v1 = vld [vmem:[%s207_s0 + $0xd] sm:$0x1]   ;;  %v102_v2 = vld [vmem:[%s207_s0 + $0xe] sm:$0x1]  }
   0x2   :  { %7 = vrot.lane.b32.xlu0 %v101_v0, %s131_s10  ;;  %19 = vrot.lane.b32.xlu1 %v103_v1, %s132_s11  ;;  %v104_v3 = vld [vmem:[%s207_s0 + $0xc] sm:$0x1]   ;;  %s133_s16 = smov 56   ;;  %s134_s17 = smov 48   ;;  %v105_v4 = vld [vmem:[%s207_s0 + $0xb] sm:$0x1]  }
   0x3   :  { %v106_v5 = vld [vmem:[%s207_s0 + $0xa] sm:$0x1]   ;;  %v2_v6 = vld [vmem:[%s207_s0] sm:$0x1]   ;;  %s135_s24 = smov 44   ;;  %s136_s25 = smov 40  }
   0x4   :  { %4 = vst.msk [vmem:[#allocation0] sm:$0x1] %vm3_vm0, %v2_v6   ;;  %v107_v7 = vld [vmem:[%s207_s0 + $0x9] sm:$0x1]   ;;  %v108_v8 = vld [vmem:[%s207_s0 + $0x8] sm:$0x1]  }
   0x5   :  { %s137_s30 = smov 36   ;;  %s138_s2 = smov 32   ;;  %v109_v9 = vld [vmem:[%s207_s0 + $0x7] sm:$0x1]   ;;  %v110_v10 = vld [vmem:[%s207_s0 + $0x6] sm:$0x1]  }
   0x6   :  { %13 = vrot.lane.b32.xlu0 %v102_v2, %s133_s16  ;;  %25 = vrot.lane.b32.xlu1 %v104_v3, %s134_s17  ;;  %s139_s7 = smov 28   ;;  %s140_s8 = smov 24   ;;  %v111_v11 = vld [vmem:[%s207_s0 + $0x5] sm:$0x1]   ;;  %v112_v12 = vld [vmem:[%s207_s0 + $0x4] sm:$0x1]  }
   0x7   :  { %s141_s13 = smov 20   ;;  %s142_s14 = smov 16   ;;  %v113_v13 = vld [vmem:[%s207_s0 + $0x3] sm:$0x1]   ;;  %v114_v14 = vld [vmem:[%s207_s0 + $0x2] sm:$0x1]  }
   0x8   :  { %s143_s19 = smov 12   ;;  %s144_s20 = smov 8   ;;  %v115_v15 = vld [vmem:[%s207_s0 + $0x1] sm:$0x1]   ;;  %vm27_vm4 = vcmask 425344   ;;  %vm33_vm5 = vcmask 392544  }
   0x9   :  { %s145_s0 = smov 4   ;;  %vm39_vm6 = vcmask 359744   ;;  %vm45_vm7 = vcmask 326944   ;;  %vm51_vm8 = vcmask 294144   ;;  %vm57_vm9 = vcmask 261344  }
   0xa   :  { %31 = vrot.lane.b32.xlu0 %v105_v4, %s135_s24  ;;  %37 = vrot.lane.b32.xlu1 %v106_v5, %s136_s25  ;;  %vm63_vm10 = vcmask 228544   ;;  %vm69_vm11 = vcmask 195744   ;;  %vm75_vm12 = vcmask 162944   ;;  %vm81_vm13 = vcmask 130144  }
   0xb   :  { %vm87_vm14 = vcmask 97344   ;;  %vm93_vm15 = vcmask 64544  }
   0xe   :  { %43 = vrot.lane.b32.xlu0 %v107_v7, %s137_s30  ;;  %49 = vrot.lane.b32.xlu1 %v108_v8, %s138_s2 }
  0x12   :  { %55 = vrot.lane.b32.xlu0 %v109_v9, %s139_s7  ;;  %61 = vrot.lane.b32.xlu1 %v110_v10, %s140_s8 }
  0x16   :  { %67 = vrot.lane.b32.xlu0 %v111_v11, %s141_s13  ;;  %73 = vrot.lane.b32.xlu1 %v112_v12, %s142_s14 }
  0x1a   :  { %79 = vrot.lane.b32.xlu0 %v113_v13, %s143_s19  ;;  %85 = vrot.lane.b32.xlu1 %v114_v14, %s144_s20 }
  0x1e   :  { %91 = vrot.lane.b32.xlu0 %v115_v15, %s145_s0 }
  0x74   :  { %v8_v16 = vpop.permute.xlu0 %7   ;;  %v20_v17 = vpop.permute.xlu1 %19  }
  0x75   :  { %10 = vst.msk [vmem:[#allocation0] sm:$0x1] %vm9_vm1, %v8_v16  }
  0x78   :  { %v14_v18 = vpop.permute.xlu0 %13   ;;  %v26_v19 = vpop.permute.xlu1 %25  }
  0x79   :  { %16 = vst.msk [vmem:[#allocation0] sm:$0x1] %vm15_vm2, %v14_v18  }
  0x7a   :  { %22 = vst.msk [vmem:[#allocation0] sm:$0x1] %vm21_vm3, %v20_v17  }
  0x7b   :  { %28 = vst.msk [vmem:[#allocation0] sm:$0x1] %vm27_vm4, %v26_v19  }
  0x7c   :  { %v32_v20 = vpop.permute.xlu0 %31   ;;  %v38_v21 = vpop.permute.xlu1 %37  }
  0x7d   :  { %34 = vst.msk [vmem:[#allocation0] sm:$0x1] %vm33_vm5, %v32_v20  }
  0x7e   :  { %40 = vst.msk [vmem:[#allocation0] sm:$0x1] %vm39_vm6, %v38_v21  }
  0x80   :  { %v44_v22 = vpop.permute.xlu0 %43   ;;  %v50_v23 = vpop.permute.xlu1 %49  }
  0x81   :  { %46 = vst.msk [vmem:[#allocation0] sm:$0x1] %vm45_vm7, %v44_v22  }
  0x82   :  { %52 = vst.msk [vmem:[#allocation0] sm:$0x1] %vm51_vm8, %v50_v23  }
  0x84   :  { %v56_v24 = vpop.permute.xlu0 %55   ;;  %v62_v25 = vpop.permute.xlu1 %61  }
  0x85   :  { %58 = vst.msk [vmem:[#allocation0] sm:$0x1] %vm57_vm9, %v56_v24  }
  0x86   :  { %64 = vst.msk [vmem:[#allocation0] sm:$0x1] %vm63_vm10, %v62_v25  }
  0x88   :  { %v68_v26 = vpop.permute.xlu0 %67   ;;  %v74_v27 = vpop.permute.xlu1 %73  }
  0x89   :  { %70 = vst.msk [vmem:[#allocation0] sm:$0x1] %vm69_vm11, %v68_v26  }
  0x8a   :  { %76 = vst.msk [vmem:[#allocation0] sm:$0x1] %vm75_vm12, %v74_v27  }
  0x8c   :  { %v80_v28 = vpop.permute.xlu0 %79   ;;  %v86_v29 = vpop.permute.xlu1 %85  }
  0x8d   :  { %82 = vst.msk [vmem:[#allocation0] sm:$0x1] %vm81_vm13, %v80_v28  }
  0x8e   :  { %88 = vst.msk [vmem:[#allocation0] sm:$0x1] %vm87_vm14, %v86_v29  }
  0x90   :  { %v92_v30 = vpop.permute.xlu0 %91  }
  0x91   :  { %94 = vst.msk [vmem:[#allocation0] sm:$0x1] %vm93_vm15, %v92_v30  }
  0x98   :  { %v98_v31 = vld [vmem:[#allocation0] sm:$0x1] }
  0x99   :  { %100 = vst [vmem:[%s208_s1] sm:$0x1] %v98_v31 }

// kernel: csa_block.1
= control target key start
LH: loop header
LB: loop body
LE: loop exit
PB: predicated region body
PF: predicated region fallthrough
CT: control target
= control target key end

     0   :  { %vm54_vm0 = vcmask 261120   ;;  %vm216_vm1 = vcmask 64512   ;;  %vm354_vm3 = vcmask 523264   ;;  %s3789_s28 = smov 64   ;;  %s3790_s13 = smov 88   ;;  %vm1930_vm4 = vcmask 130048   ;;  %s4708_s1 = inlined_call_operand.vmem [shape: f32[32,96], index: 1, kind: input, shape index: {}]   ;;  %s4709_s0 = inlined_call_operand.vmem [shape: f32[64,32], index: 0, kind: input, shape index: {}]   ;;  %s4710_s2 = inlined_call_operand.vmem [shape: f32[1,96], index: 2, kind: input, shape index: {}]   ;;  %s4711_s5 = inlined_call_operand.vmem [shape: f32[64,64], index: 5, kind: input, shape index: {}]   ;;  %s4712_s3 = inlined_call_operand.vmem [shape: f32[32,32], index: 3, kind: input, shape index: {}]   ;;  %s4713_s4 = inlined_call_operand.vmem [shape: f32[1,32], index: 4, kind: input, shape index: {}]   ;;  %s4714_s6 = inlined_call_operand.vmem [shape: f32[4,64], index: 6, kind: input, shape index: {}]   ;;  %s4715_s7 = inlined_call_operand.vmem [shape: f32[64,4], index: 7, kind: input, shape index: {}]   ;;  %s4716_s8 = inlined_call_operand.vmem [shape: f32[4,1], index: 8, kind: input, shape index: {}]   ;;  %s4717_s9 = inlined_call_operand.vmem [shape: f32[4,1], index: 9, kind: input, shape index: {}]   ;;  %s4718_s10 = inlined_call_operand.vmem [shape: f32[64,32], index: 10, kind: output, shape index: {}]  }
   0x1   :  { %v43_v0 = vld [vmem:[%s4708_s1] sm:$0xff]  ;;  %v44_v1 = vld [vmem:[%s4708_s1 + $0x8] sm:$0xff]  ;;  %v45_v2 = vld [vmem:[%s4708_s1 + $0x10] sm:$0xff]  ;;  %s3791_s14 = smov 120   ;;  %s3792_s15 = smov 56   ;;  %vm1939_vm5 = vcmask 195584  }
   0x2   :  { %v3268_v3 = vpack.c.bf16 %v44_v1, %v43_v0  ;;  %v46_v4 = vld [vmem:[%s4708_s1 + $0x18] sm:$0xff]  ;;  %v35_v5 = vld [vmem:[%s4709_s0] sm:$0xff]  ;;  %v36_v7 = vld [vmem:[%s4709_s0 + $0x8] sm:$0xff]  ;;  %s3793_s16 = smov 80   ;;  %s3794_s17 = smov 112   ;;  %vm3803_vm6 = vmmov 0  }
   0x3   :  { %v3272_v6 = vpack.c.bf16 %v46_v4, %v45_v2  ;;  %2946 = vmatprep.mubr.msk.f32.mxu0 %vm54_vm0, %v35_v5  ;;  %v37_v8 = vld [vmem:[%s4709_s0 + $0x10] sm:$0xff]  ;;  %v38_v9 = vld [vmem:[%s4709_s0 + $0x18] sm:$0xff]  ;;  %v39_v10 = vld [vmem:[%s4709_s0 + $0x20] sm:$0xff]  ;;  %s3797_s18 = smov 104   ;;  %s3801_s22 = smov 24   ;;  %vm2248_vm7 = vcmask 257024  }
   0x4   :  { %3269 = vmatprep.subr.bf16.mxu0 %v3268_v3  ;;  %v40_v11 = vld [vmem:[%s4709_s0 + $0x28] sm:$0xff]  ;;  %v41_v12 = vld [vmem:[%s4709_s0 + $0x30] sm:$0xff]  ;;  %v42_v13 = vld [vmem:[%s4709_s0 + $0x38] sm:$0xff]  ;;  %s3788_s0 = smov 96   ;;  %vm2266_vm8 = vcmask 31744   ;;  %vm2291_vm9 = vcmask 1043456  }
   0x5   :  { %3271 = vmatpush3.bf16.msra.mxu0 %v3268_v3  ;;  %v2616_v14 = vld [vmem:[%s4710_s2] ss:$0 sm:$0xff]  ;;  %vm3948_vm2 = vmpackc.low %vm216_vm1, %vm216_vm1  ;;  %v3985_v52 = vld [vmem:[%s4711_s5 + $0x8] sm:$0xff]  ;;  %s3796_s2 = smov 72  }
   0x6   :  { %3273 = vmatprep.subr.bf16.mxu0 %v3272_v6  ;;  %v3990_v53 = vld [vmem:[%s4711_s5] sm:$0xff]  ;;  %v3997_v58 = vld [vmem:[%s4711_s5 + $0x18] sm:$0xff]  ;;  %v4007_v0 = vld [vmem:[%s4711_s5 + $0x10] sm:$0xff] }
   0x7   :  { %v4015_v4 = vld [vmem:[%s4711_s5 + $0x28] sm:$0xff] }
   0x9   :  { %3275 = vmatpush3.bf16.msra.mxu0 %v3272_v6 }
   0xc   :  { %2947 = vmatmul.mubr.msk.f32.vlgmr.msra.gmra.mrb[0].mxu0 %vm54_vm0, %v36_v7 }
   0xd   :  { %2949 = vmatprep.mubr.msk.f32.mxu0 %vm54_vm0, %v37_v8 }
  0x10   :  { %2950 = vmatmul.mubr.msk.f32.gmra.mrb[2].mxu0 %vm54_vm0, %v38_v9  ;;  %v4022_v9 = vld [vmem:[%s4711_s5 + $0x38] sm:$0xff] }
  0x11   :  { %2952 = vmatprep.mubr.msk.f32.mxu0 %vm54_vm0, %v39_v10 }
  0x14   :  { %2953 = vmatmul.mubr.msk.f32.gmra.mrb[4].mxu0 %vm54_vm0, %v40_v11 }
  0x15   :  { %2955 = vmatprep.mubr.msk.f32.mxu0 %vm54_vm0, %v41_v12 }
  0x18   :  { %2956 = vmatmul.mubr.msk.f32.gmra.mrb[6].mxu0 %vm54_vm0, %v42_v13 }
  0xdf   :  { %v2948_v15 = vpop.f32.mrb[0].mxu0 }
  0xe0   :  { %v3908_v16 = vadd.f32 %v2948_v15, %v2616_v14  ;;  %v145_v17 = vpop.f32.mrb[1].mxu0 }
  0xe1   :  { %v3910_v18 = vadd.f32 %v2616_v14, %v145_v17 }
  0xe3   :  { %2974 = vmatprep.mubr.msk.f32.mxu1 %vm216_vm1, %v3910_v18  ;;  %v3916_v19 = vpack.i.bf16 %v3908_v16, %v3910_v18  ;;  %v2951_v20 = vpop.f32.mrb[2].mxu0 }
  0xe4   :  { %v3918_v21 = vadd.f32 %v2951_v20, %v2616_v14  ;;  %v155_v22 = vpop.f32.mrb[3].mxu0  ;;  %v4043_v20 = vld [vmem:[%s4711_s5 + $0x30] sm:$0xff] }
  0xe5   :  { %3489 = vrot.lane.b32.xlu0 %v3916_v19, %s3788_s0  ;;  %v3921_v23 = vadd.f32 %v2616_v14, %v155_v22 }
  0xe7   :  { %v3925_v24 = vpack.i.bf16 %v3918_v21, %v3921_v23  ;;  %v2954_v25 = vpop.f32.mrb[4].mxu0 }
  0xe8   :  { %v3927_v26 = vadd.f32 %v2954_v25, %v2616_v14  ;;  %v165_v27 = vpop.f32.mrb[5].mxu0 }
  0xe9   :  { %3494 = vrot.lane.b32.xlu0 %v3925_v24, %s3788_s0  ;;  %v3930_v28 = vadd.f32 %v2616_v14, %v165_v27 }
  0xeb   :  { %v3934_v29 = vpack.i.bf16 %v3927_v26, %v3930_v28  ;;  %v2957_v30 = vpop.f32.mrb[6].mxu0 }
  0xec   :  { %v3936_v31 = vadd.f32 %v2957_v30, %v2616_v14  ;;  %v175_v32 = vpop.f32.mrb[7].mxu0 }
  0xed   :  { %3499 = vrot.lane.b32.xlu1 %v3934_v29, %s3788_s0  ;;  %v3939_v33 = vadd.f32 %v2616_v14, %v175_v32  ;;  %v4035_v14 = vld [vmem:[%s4711_s5 + $0x20] sm:$0xff] }
  0xef   :  { %v3943_v34 = vpack.i.bf16 %v3936_v31, %v3939_v33 }
  0xf1   :  { %3504 = vrot.lane.b32.xlu1 %v3943_v34, %s3788_s0  ;;  %s3795_s0 = smov 48  }
 0x157   :  { %v3490_v35 = vpop.permute.xlu0 %3489 }
 0x158   :  { %v3492_v36 = vunpack.i.h.bf16 %v3490_v35  ;;  %v3491_v37 = vunpack.i.l.bf16 %v3490_v35 }
 0x15a   :  { %v3276_v39 = vpack.c.bf16 %v3492_v36, %v3491_v37 }
 0x15b   :  { %v3495_v40 = vpop.permute.xlu0 %3494 }
 0x15c   :  { %3278 = vmatprep.subr.msk.bf16.mxu1 %vm3948_vm2, %v3276_v39  ;;  %v3497_v41 = vunpack.i.h.bf16 %v3495_v40  ;;  %v3496_v42 = vunpack.i.l.bf16 %v3495_v40 }
 0x15d   :  { %3281 = vmatpush3.bf16.xpose.msk.msra.mxu1 %vm3948_vm2, %v3276_v39 }
 0x15e   :  { %v3282_v43 = vpack.c.bf16 %v3497_v41, %v3496_v42 }
 0x15f   :  { %v3500_v44 = vpop.permute.xlu1 %3499 }
 0x160   :  { %3284 = vmatprep.subr.msk.bf16.mxu1 %vm3948_vm2, %v3282_v43  ;;  %v3502_v45 = vunpack.i.h.bf16 %v3500_v44  ;;  %v3501_v46 = vunpack.i.l.bf16 %v3500_v44 }
 0x162   :  { %v3288_v47 = vpack.c.bf16 %v3502_v45, %v3501_v46 }
 0x163   :  { %v3505_v48 = vpop.permute.xlu1 %3504 }
 0x164   :  { %v3507_v49 = vunpack.i.h.bf16 %v3505_v48  ;;  %v3506_v50 = vunpack.i.l.bf16 %v3505_v48 }
 0x165   :  { %3287 = vmatpush3.bf16.xpose.msk.msra.mxu1 %vm3948_vm2, %v3282_v43 }
 0x166   :  { %3290 = vmatprep.subr.msk.bf16.mxu1 %vm3948_vm2, %v3288_v47  ;;  %v3294_v51 = vpack.c.bf16 %v3507_v49, %v3506_v50 }
 0x16d   :  { %3293 = vmatpush3.bf16.xpose.msk.msra.mxu1 %vm3948_vm2, %v3288_v47 }
 0x16e   :  { %3296 = vmatprep.subr.msk.bf16.mxu1 %vm3948_vm2, %v3294_v51 }
 0x175   :  { %3299 = vmatpush3.bf16.xpose.msk.msra.mxu1 %vm3948_vm2, %v3294_v51 }
 0x17c   :  { %2975 = vmatmul.mubr.msk.f32.vlgmr.msra.gmra.mrb[0].mxu1 %vm216_vm1, %v3908_v16 }
 0x17d   :  { %2977 = vmatprep.mubr.msk.f32.mxu1 %vm216_vm1, %v3921_v23 }
 0x180   :  { %2978 = vmatmul.mubr.msk.f32.gmra.mrb[2].mxu1 %vm216_vm1, %v3918_v21 }
 0x181   :  { %2980 = vmatprep.mubr.msk.f32.mxu1 %vm216_vm1, %v3930_v28 }
 0x184   :  { %2981 = vmatmul.mubr.msk.f32.gmra.mrb[4].mxu1 %vm216_vm1, %v3927_v26 }
 0x185   :  { %2983 = vmatprep.mubr.msk.f32.mxu1 %vm216_vm1, %v3939_v33 }
 0x188   :  { %2984 = vmatmul.mubr.msk.f32.gmra.mrb[6].mxu1 %vm216_vm1, %v3936_v31 }
 0x24f   :  { %v2976_v54 = vpop.f32.mrb[0].mxu1 }
 0x250   :  { %v321_v55 = vadd.f32 %v2976_v54, %v3985_v52  ;;  %v315_v56 = vpop.f32.mrb[1].mxu1 }
 0x251   :  { %v316_v57 = vadd.f32 %v315_v56, %v3990_v53 }
 0x252   :  { %v358_v59 = vsel %vm354_vm3, %v321_v55, -inf }
 0x253   :  { %359 = vmax.xlane.f32.xlu1 %v358_v59  ;;  %v2979_v60 = vpop.f32.mrb[2].mxu1  ;;  %v355_v61 = vsel %vm354_vm3, %v316_v57, -inf }
 0x254   :  { %v4002_v62 = vadd.f32 %v2979_v60, %v3997_v58  ;;  %v325_v63 = vpop.f32.mrb[3].mxu1  ;;  %356 = vmax.xlane.f32.xlu0 %v355_v61 }
 0x255   :  { %v326_v2 = vadd.f32 %v325_v63, %v4007_v0 }
 0x256   :  { %v364_v1 = vsel %vm354_vm3, %v4002_v62, -inf }
 0x257   :  { %v2982_v3 = vpop.f32.mrb[4].mxu1  ;;  %v361_v8 = vsel %vm354_vm3, %v326_v2, -inf }
 0x258   :  { %v335_v5 = vpop.f32.mrb[5].mxu1  ;;  %365 = vmax.xlane.f32.xlu0 %v364_v1  ;;  %v341_v6 = vadd.f32 %v2982_v3, %v4015_v4 }
 0x259   :  { %v336_v15 = vadd.f32 %v335_v5, %v4035_v14 }
 0x25a   :  { %v370_v12 = vsel %vm354_vm3, %v341_v6, -inf }
 0x25b   :  { %v2985_v7 = vpop.f32.mrb[6].mxu1  ;;  %v367_v17 = vsel %vm354_vm3, %v336_v15, -inf }
 0x25c   :  { %v345_v10 = vpop.f32.mrb[7].mxu1  ;;  %362 = vmax.xlane.f32.xlu0 %v361_v8  ;;  %v4025_v11 = vadd.f32 %v2985_v7, %v4022_v9 }
 0x25d   :  { %v4046_v22 = vadd.f32 %v345_v10, %v4043_v20 }
 0x25e   :  { %v376_v13 = vsel %vm354_vm3, %v4025_v11, -inf }
 0x25f   :  { %v373_v25 = vsel %vm354_vm3, %v4046_v22, -inf }
 0x260   :  { %371 = vmax.xlane.f32.xlu0 %v370_v12 }
 0x264   :  { %3509 = vrot.lane.b32.xlu1 %v3916_v19, %s3789_s28  ;;  %377 = vmax.xlane.f32.xlu0 %v376_v13 }
 0x27a   :  { %3514 = vrot.lane.b32.xlu0 %v3925_v24, %s3789_s28 }
 0x288   :  { %368 = vmax.xlane.f32.xlu1 %v367_v17 }
 0x299   :  { %3519 = vrot.lane.b32.xlu1 %v3934_v29, %s3789_s28 }
 0x2bd   :  { %374 = vmax.xlane.f32.xlu1 %v373_v25 }
 0x2ce   :  { %3524 = vrot.lane.b32.xlu1 %v3943_v34, %s3789_s28 }
 0x2e0   :  { %v360_v27 = vpop.xlane.xlu1 %359 }
 0x2e1   :  { %v380_v30 = vsub.f32 %v321_v55, %v360_v27  ;;  %v357_v32 = vpop.xlane.xlu0 %356 }
 0x2e2   :  { %v379_v35 = vsub.f32 %v316_v57, %v357_v32 }
 0x2e3   :  { %v389_v36 = vmul.f32 1.442695, %v380_v30 }
 0x2e4   :  { %v387_v37 = vmul.f32 1.442695, %v379_v35  ;;  %v3510_v39 = vpop.permute.xlu1 %3509 }
 0x2e5   :  { %3650 = vpow2.f32 %v389_v36  ;;  %v3512_v40 = vunpack.i.h.bf16 %v3510_v39  ;;  %v3511_v41 = vunpack.i.l.bf16 %v3510_v39  ;;  %v366_v42 = vpop.xlane.xlu0 %365 }
 0x2e6   :  { %3652 = vpow2.f32 %v387_v37  ;;  %v382_v5 = vsub.f32 %v4002_v62, %v366_v42 }
 0x2e7   :  { %v3300_v43 = vpack.c.bf16 %v3512_v40, %v3511_v41 }
 0x2e8   :  { %v393_v7 = vmul.f32 1.442695, %v382_v5 }
 0x2e9   :  { %3301 = vmatprep.subr.bf16.mxu0 %v3300_v43  ;;  %v363_v44 = vpop.xlane.xlu0 %362 }
 0x2ea   :  { %v381_v45 = vsub.f32 %v326_v2, %v363_v44  ;;  %3303 = vmatpush3.bf16.msra.mxu0 %v3300_v43 }
 0x2ec   :  { %v391_v46 = vmul.f32 1.442695, %v381_v45 }
 0x2ed   :  { %v372_v47 = vpop.xlane.xlu0 %371 }
 0x2ee   :  { %3654 = vpow2.f32 %v391_v46  ;;  %v384_v48 = vsub.f32 %v341_v6, %v372_v47 }
 0x2ef   :  { %v4051_v49 = vpop.eup %3650 }
 0x2f0   :  { %v4053_v50 = vpop.eup %3652  ;;  %v397_v51 = vmul.f32 1.442695, %v384_v48  ;;  %v406_v54 = vsel %vm354_vm3, %v4051_v49, 0.0 }
 0x2f1   :  { %407 = vadd.xlane.f32.xlu0 %v406_v54  ;;  %v378_v55 = vpop.xlane.xlu0 %377  ;;  %v403_v56 = vsel %vm354_vm3, %v4053_v50, 0.0 }
 0x2f2   :  { %3656 = vpow2.f32 %v397_v51  ;;  %404 = vadd.xlane.f32.xlu1 %v403_v56  ;;  %v386_v6 = vsub.f32 %v4025_v11, %v378_v55 }
 0x2f3   :  { %3658 = vpow2.f32 %v393_v7 }
 0x2f4   :  { %v401_v12 = vmul.f32 1.442695, %v386_v6 }
 0x2f5   :  { %v3515_v57 = vpop.permute.xlu0 %3514 }
 0x2f6   :  { %v3517_v59 = vunpack.i.h.bf16 %v3515_v57  ;;  %v3516_v60 = vunpack.i.l.bf16 %v3515_v57 }
 0x2f8   :  { %v4059_v61 = vpop.eup %3654  ;;  %v3304_v63 = vpack.c.bf16 %v3517_v59, %v3516_v60 }
 0x2f9   :  { %v409_v1 = vsel %vm354_vm3, %v4059_v61, 0.0 }
 0x2fa   :  { %410 = vadd.xlane.f32.xlu0 %v409_v1  ;;  %3305 = vmatprep.subr.bf16.mxu0 %v3304_v63 }
 0x2fb   :  { %3307 = vmatpush3.bf16.msra.mxu0 %v3304_v63 }
 0x2fc   :  { %v4063_v2 = vpop.eup %3656 }
 0x2fd   :  { %v418_v3 = vsel %vm354_vm3, %v4063_v2, 0.0  ;;  %v4071_v32 = vpop.eup %3658 }
 0x2fe   :  { %419 = vadd.xlane.f32.xlu0 %v418_v3 }
 0x303   :  { %3529 = vrot.lane.b32.xlu1 %v3916_v19, %s3790_s13 }
 0x315   :  { %v369_v8 = vpop.xlane.xlu1 %368 }
 0x316   :  { %v383_v10 = vsub.f32 %v336_v15, %v369_v8  ;;  %v412_v15 = vsel %vm354_vm3, %v4071_v32, 0.0 }
 0x318   :  { %v395_v13 = vmul.f32 1.442695, %v383_v10 }
 0x319   :  { %v3520_v17 = vpop.permute.xlu1 %3519 }
 0x31a   :  { %3660 = vpow2.f32 %v395_v13  ;;  %v3522_v25 = vunpack.i.h.bf16 %v3520_v17  ;;  %v3521_v27 = vunpack.i.l.bf16 %v3520_v17 }
 0x31b   :  { %3662 = vpow2.f32 %v401_v12 }
 0x31c   :  { %v3308_v30 = vpack.c.bf16 %v3522_v25, %v3521_v27 }
 0x31e   :  { %3309 = vmatprep.subr.bf16.mxu0 %v3308_v30 }
 0x31f   :  { %3311 = vmatpush3.bf16.msra.mxu0 %v3308_v30 }
 0x324   :  { %v4073_v35 = vpop.eup %3660 }
 0x325   :  { %v415_v62 = vsel %vm354_vm3, %v4073_v35, 0.0  ;;  %v4077_v11 = vpop.eup %3662 }
 0x326   :  { %416 = vadd.xlane.f32.xlu0 %v415_v62  ;;  %v424_v36 = vsel %vm354_vm3, %v4077_v11, 0.0 }
 0x327   :  { %413 = vadd.xlane.f32.xlu1 %v412_v15 }
 0x32a   :  { %425 = vadd.xlane.f32.xlu0 %v424_v36 }
 0x338   :  { %3539 = vrot.lane.b32.xlu1 %v3934_v29, %s3790_s13 }
 0x33c   :  { %3544 = vrot.lane.b32.xlu1 %v3943_v34, %s3790_s13 }
 0x340   :  { %596 = vrot.lane.b32.xlu1 %v3910_v18, %s3791_s14 }
 0x344   :  { %598 = vrot.lane.b32.xlu1 %v3908_v16, %s3791_s14 }
 0x348   :  { %602 = vrot.lane.b32.xlu1 %v3918_v21, %s3791_s14 }
 0x34a   :  { %v375_v37 = vpop.xlane.xlu1 %374 }
 0x34b   :  { %v385_v39 = vsub.f32 %v4046_v22, %v375_v37 }
 0x34c   :  { %606 = vrot.lane.b32.xlu1 %v3927_v26, %s3791_s14 }
 0x34d   :  { %v399_v40 = vmul.f32 1.442695, %v385_v39 }
 0x34e   :  { %v3525_v41 = vpop.permute.xlu1 %3524 }
 0x34f   :  { %3664 = vpow2.f32 %v399_v40  ;;  %v3527_v42 = vunpack.i.h.bf16 %v3525_v41  ;;  %v3526_v43 = vunpack.i.l.bf16 %v3525_v41 }
 0x350   :  { %610 = vrot.lane.b32.xlu1 %v3936_v31, %s3791_s14 }
 0x351   :  { %v3312_v44 = vpack.c.bf16 %v3527_v42, %v3526_v43 }
 0x353   :  { %3313 = vmatprep.subr.bf16.mxu0 %v3312_v44 }
 0x354   :  { %3315 = vmatpush3.bf16.msra.mxu0 %v3312_v44 }
 0x359   :  { %v3665_v45 = vpop.eup %3664 }
 0x35a   :  { %v421_v46 = vsel %vm354_vm3, %v3665_v45, 0.0 }
 0x35b   :  { %422 = vadd.xlane.f32.xlu0 %v421_v46 }
 0x371   :  { %3534 = vrot.lane.b32.xlu0 %v3925_v24, %s3790_s13 }
 0x375   :  { %600 = vrot.lane.b32.xlu0 %v3921_v23, %s3791_s14 }
 0x379   :  { %604 = vrot.lane.b32.xlu0 %v3930_v28, %s3791_s14 }
 0x37d   :  { %608 = vrot.lane.b32.xlu0 %v3939_v33, %s3791_s14  ;;  %s3798_s14 = smov 40  }
 0x37e   :  { %v408_v22 = vpop.xlane.xlu0 %407 }
 0x37f   :  { %3666 = vrcp.f32 %v408_v22  ;;  %v405_v47 = vpop.xlane.xlu1 %404 }
 0x380   :  { %3668 = vrcp.f32 %v405_v47 }
 0x383   :  { %v3530_v48 = vpop.permute.xlu1 %3529 }
 0x384   :  { %v3532_v51 = vunpack.i.h.bf16 %v3530_v48  ;;  %v3531_v54 = vunpack.i.l.bf16 %v3530_v48 }
 0x386   :  { %v3316_v55 = vpack.c.bf16 %v3532_v51, %v3531_v54 }
 0x387   :  { %v411_v56 = vpop.xlane.xlu0 %410 }
 0x388   :  { %3670 = vrcp.f32 %v411_v56  ;;  %3318 = vmatprep.subr.msk.bf16.mxu0 %vm3948_vm2, %v3316_v55 }
 0x389   :  { %v3667_v57 = vpop.eup %3666 }
 0x38a   :  { %v3669_v59 = vpop.eup %3668  ;;  %v436_v63 = vmul.f32 %v3667_v57, %v4051_v49 }
 0x38b   :  { %v435_v60 = vmul.f32 %v3669_v59, %v4053_v50  ;;  %v420_v5 = vpop.xlane.xlu0 %419 }
 0x38d   :  { %3002 = vmatprep.mubr.msk.f32.mxu0 %vm354_vm3, %v435_v60 }
 0x38e   :  { %3003 = vmatmul.mubr.msk.f32.vlgmr.msra.gmra.mrb[8].mxu0 %vm354_vm3, %v436_v63 }
 0x38f   :  { %3321 = vmatpush3.bf16.xpose.msk.msra.mxu0 %vm3948_vm2, %v3316_v55 }
 0x392   :  { %v3671_v1 = vpop.eup %3670 }
 0x393   :  { %v437_v3 = vmul.f32 %v3671_v1, %v4059_v61 }
 0x395   :  { %3005 = vmatprep.mubr.msk.f32.mxu0 %vm354_vm3, %v437_v3 }
 0x3b3   :  { %v417_v6 = vpop.xlane.xlu0 %416 }
 0x3b4   :  { %3672 = vrcp.f32 %v417_v6  ;;  %v414_v7 = vpop.xlane.xlu1 %413 }
 0x3b5   :  { %3674 = vrcp.f32 %v414_v7 }
 0x3b6   :  { %3676 = vrcp.f32 %v420_v5 }
 0x3b7   :  { %v426_v13 = vpop.xlane.xlu0 %425 }
 0x3b8   :  { %3678 = vrcp.f32 %v426_v13  ;;  %v3540_v25 = vpop.permute.xlu1 %3539 }
 0x3b9   :  { %v3542_v30 = vunpack.i.h.bf16 %v3540_v25  ;;  %v3541_v62 = vunpack.i.l.bf16 %v3540_v25 }
 0x3bc   :  { %v3545_v37 = vpop.permute.xlu1 %3544 }
 0x3bd   :  { %v3547_v41 = vunpack.i.h.bf16 %v3545_v37  ;;  %v3546_v42 = vunpack.i.l.bf16 %v3545_v37 }
 0x3be   :  { %v3673_v50 = vpop.eup %3672 }
 0x3bf   :  { %v3675_v49 = vpop.eup %3674  ;;  %v439_v12 = vmul.f32 %v3673_v50, %v4073_v35  ;;  %v3328_v35 = vpack.c.bf16 %v3542_v30, %v3541_v62  ;;  %v3334_v46 = vpack.c.bf16 %v3547_v41, %v3546_v42 }
 0x3c0   :  { %v438_v8 = vmul.f32 %v3675_v49, %v4071_v32  ;;  %v3677_v10 = vpop.eup %3676  ;;  %v597_v44 = vpop.permute.xlu1 %596 }
 0x3c1   :  { %v440_v61 = vmul.f32 %v3677_v10, %v4063_v2 }
 0x3c2   :  { %3006 = vmatmul.mubr.msk.f32.gmra.mrb[10].mxu0 %vm354_vm3, %v438_v8  ;;  %v3679_v39 = vpop.eup %3678 }
 0x3c3   :  { %3008 = vmatprep.mubr.msk.f32.mxu0 %vm354_vm3, %v439_v12  ;;  %v442_v43 = vmul.f32 %v3679_v39, %v4077_v11 }
 0x3c4   :  { %v599_v22 = vpop.permute.xlu1 %598 }
 0x3c6   :  { %3009 = vmatmul.mubr.msk.f32.gmra.mrb[12].mxu0 %vm354_vm3, %v440_v61 }
 0x3c8   :  { %v603_v11 = vpop.permute.xlu1 %602 }
 0x3cc   :  { %v607_v48 = vpop.permute.xlu1 %606 }
 0x3d0   :  { %v611_v54 = vpop.permute.xlu1 %610 }
 0x3e8   :  { %v423_v17 = vpop.xlane.xlu0 %422 }
 0x3e9   :  { %3680 = vrcp.f32 %v423_v17 }
 0x3ec   :  { %v3535_v27 = vpop.permute.xlu0 %3534 }
 0x3ed   :  { %v3537_v32 = vunpack.i.h.bf16 %v3535_v27  ;;  %v3536_v15 = vunpack.i.l.bf16 %v3535_v27 }
 0x3ef   :  { %v3322_v36 = vpack.c.bf16 %v3537_v32, %v3536_v15 }
 0x3f1   :  { %3324 = vmatprep.subr.msk.bf16.mxu0 %vm3948_vm2, %v3322_v36 }
 0x3f2   :  { %3327 = vmatpush3.bf16.xpose.msk.msra.mxu0 %vm3948_vm2, %v3322_v36 }
 0x3f3   :  { %v3681_v2 = vpop.eup %3680  ;;  %3330 = vmatprep.subr.msk.bf16.mxu0 %vm3948_vm2, %v3328_v35 }
 0x3f4   :  { %v441_v40 = vmul.f32 %v3681_v2, %v3665_v45  ;;  %v601_v45 = vpop.permute.xlu0 %600 }
 0x3f6   :  { %3011 = vmatprep.mubr.msk.f32.mxu0 %vm354_vm3, %v441_v40 }
 0x3f7   :  { %3012 = vmatmul.mubr.msk.f32.gmra.mrb[14].mxu0 %vm354_vm3, %v442_v43 }
 0x3f8   :  { %3030 = vmatprep.mubr.msk.f32.mxu0 %vm216_vm1, %v597_v44  ;;  %v605_v47 = vpop.permute.xlu0 %604 }
 0x3fa   :  { %3333 = vmatpush3.bf16.xpose.msk.msra.mxu0 %vm3948_vm2, %v3328_v35 }
 0x3fb   :  { %3336 = vmatprep.subr.msk.bf16.mxu0 %vm3948_vm2, %v3334_v46 }
 0x3fc   :  { %v609_v51 = vpop.permute.xlu0 %608 }
 0x402   :  { %3339 = vmatpush3.bf16.xpose.msk.msra.mxu0 %vm3948_vm2, %v3334_v46 }
 0x409   :  { %3031 = vmatmul.mubr.msk.f32.vlgmr.msra.gmra.mrb[16].mxu0 %vm216_vm1, %v599_v22 }
 0x40a   :  { %3033 = vmatprep.mubr.msk.f32.mxu0 %vm216_vm1, %v601_v45 }
 0x40d   :  { %3034 = vmatmul.mubr.msk.f32.gmra.mrb[18].mxu0 %vm216_vm1, %v603_v11 }
 0x40e   :  { %3036 = vmatprep.mubr.msk.f32.mxu0 %vm216_vm1, %v605_v47 }
 0x411   :  { %3037 = vmatmul.mubr.msk.f32.gmra.mrb[20].mxu0 %vm216_vm1, %v607_v48 }
 0x412   :  { %3039 = vmatprep.mubr.msk.f32.mxu0 %vm216_vm1, %v609_v51 }
 0x415   :  { %3040 = vmatmul.mubr.msk.f32.gmra.mrb[22].mxu0 %vm216_vm1, %v611_v54 }
 0x461   :  { %v4138_v55 = vpop.f32.mrb[8].mxu0 }
 0x462   :  { %v4140_v56 = vpop.f32.mrb[9].mxu0 }
 0x495   :  { %v4142_v57 = vpop.f32.mrb[10].mxu0 }
 0x496   :  { %v4144_v59 = vpop.f32.mrb[11].mxu0 }
 0x499   :  { %v4146_v60 = vpop.f32.mrb[12].mxu0 }
 0x49a   :  { %v4148_v63 = vpop.f32.mrb[13].mxu0 }
 0x4ca   :  { %v4150_v1 = vpop.f32.mrb[14].mxu0 }
 0x4cb   :  { %v4152_v3 = vpop.f32.mrb[15].mxu0 }
 0x4dc   :  { %v3032_v5 = vpop.f32.mrb[16].mxu0 }
 0x4dd   :  { %v732_v6 = vadd.f32 %v3032_v5, %v3985_v52  ;;  %v726_v7 = vpop.f32.mrb[17].mxu0 }
 0x4de   :  { %v727_v50 = vadd.f32 %v726_v7, %v3990_v53 }
 0x4df   :  { %v768_v49 = vsel %vm354_vm3, %v732_v6, -inf }
 0x4e0   :  { %769 = vmax.xlane.f32.xlu1 %v768_v49  ;;  %v3035_v8 = vpop.f32.mrb[18].mxu0  ;;  %v765_v10 = vsel %vm354_vm3, %v727_v50, -inf }
 0x4e1   :  { %v4159_v12 = vadd.f32 %v3035_v8, %v3997_v58  ;;  %v736_v61 = vpop.f32.mrb[19].mxu0  ;;  %766 = vmax.xlane.f32.xlu0 %v765_v10 }
 0x4e2   :  { %v737_v17 = vadd.f32 %v736_v61, %v4007_v0 }
 0x4e3   :  { %v774_v13 = vsel %vm354_vm3, %v4159_v12, -inf }
 0x4e4   :  { %v3038_v25 = vpop.f32.mrb[20].mxu0  ;;  %v771_v32 = vsel %vm354_vm3, %v737_v17, -inf }
 0x4e5   :  { %v746_v27 = vpop.f32.mrb[21].mxu0  ;;  %775 = vmax.xlane.f32.xlu0 %v774_v13  ;;  %v752_v30 = vadd.f32 %v3038_v25, %v4015_v4 }
 0x4e6   :  { %v747_v39 = vadd.f32 %v746_v27, %v4035_v14 }
 0x4e7   :  { %v780_v35 = vsel %vm354_vm3, %v752_v30, -inf }
 0x4e8   :  { %v3041_v62 = vpop.f32.mrb[22].mxu0  ;;  %v777_v2 = vsel %vm354_vm3, %v747_v39, -inf }
 0x4e9   :  { %v756_v15 = vpop.f32.mrb[23].mxu0  ;;  %772 = vmax.xlane.f32.xlu0 %v771_v32  ;;  %v4167_v36 = vadd.f32 %v3041_v62, %v4022_v9 }
 0x4ea   :  { %v4178_v40 = vadd.f32 %v756_v15, %v4043_v20 }
 0x4eb   :  { %v786_v37 = vsel %vm354_vm3, %v4167_v36, -inf }
 0x4ec   :  { %v783_v41 = vsel %vm354_vm3, %v4178_v40, -inf }
 0x4ed   :  { %781 = vmax.xlane.f32.xlu0 %v780_v35 }
 0x4f1   :  { %3549 = vrot.lane.b32.xlu1 %v3916_v19, %s3792_s15  ;;  %787 = vmax.xlane.f32.xlu0 %v786_v37 }
 0x507   :  { %3554 = vrot.lane.b32.xlu0 %v3925_v24, %s3792_s15 }
 0x515   :  { %778 = vmax.xlane.f32.xlu1 %v777_v2 }
 0x526   :  { %3559 = vrot.lane.b32.xlu1 %v3934_v29, %s3792_s15 }
 0x54a   :  { %784 = vmax.xlane.f32.xlu1 %v783_v41 }
 0x55b   :  { %3564 = vrot.lane.b32.xlu1 %v3943_v34, %s3792_s15  ;;  %s3800_s15 = smov 16  }
 0x56d   :  { %v770_v42 = vpop.xlane.xlu1 %769 }
 0x56e   :  { %v790_v43 = vsub.f32 %v732_v6, %v770_v42  ;;  %v767_v44 = vpop.xlane.xlu0 %766 }
 0x56f   :  { %v789_v46 = vsub.f32 %v727_v50, %v767_v44 }
 0x570   :  { %v799_v22 = vmul.f32 1.442695, %v790_v43 }
 0x571   :  { %v797_v45 = vmul.f32 1.442695, %v789_v46  ;;  %v3550_v11 = vpop.permute.xlu1 %3549 }
 0x572   :  { %3682 = vpow2.f32 %v799_v22  ;;  %v3552_v47 = vunpack.i.h.bf16 %v3550_v11  ;;  %v3551_v48 = vunpack.i.l.bf16 %v3550_v11  ;;  %v776_v51 = vpop.xlane.xlu0 %775 }
 0x573   :  { %3684 = vpow2.f32 %v797_v45  ;;  %v792_v41 = vsub.f32 %v4159_v12, %v776_v51 }
 0x574   :  { %v3340_v54 = vpack.c.bf16 %v3552_v47, %v3551_v48 }
 0x575   :  { %v803_v43 = vmul.f32 1.442695, %v792_v41 }
 0x576   :  { %3341 = vmatprep.subr.bf16.mxu1 %v3340_v54  ;;  %v773_v5 = vpop.xlane.xlu0 %772 }
 0x577   :  { %v791_v7 = vsub.f32 %v737_v17, %v773_v5  ;;  %3343 = vmatpush3.bf16.msra.mxu1 %v3340_v54 }
 0x579   :  { %v801_v49 = vmul.f32 1.442695, %v791_v7 }
 0x57a   :  { %v782_v8 = vpop.xlane.xlu0 %781 }
 0x57b   :  { %3686 = vpow2.f32 %v801_v49  ;;  %v794_v10 = vsub.f32 %v752_v30, %v782_v8 }
 0x57c   :  { %v4183_v6 = vpop.eup %3682 }
 0x57d   :  { %v4185_v50 = vpop.eup %3684  ;;  %v807_v61 = vmul.f32 1.442695, %v794_v10  ;;  %v816_v13 = vsel %vm354_vm3, %v4183_v6, 0.0 }
 0x57e   :  { %817 = vadd.xlane.f32.xlu0 %v816_v13  ;;  %v788_v25 = vpop.xlane.xlu0 %787  ;;  %v813_v27 = vsel %vm354_vm3, %v4185_v50, 0.0 }
 0x57f   :  { %3688 = vpow2.f32 %v807_v61  ;;  %814 = vadd.xlane.f32.xlu1 %v813_v27  ;;  %v796_v42 = vsub.f32 %v4167_v36, %v788_v25 }
 0x580   :  { %3690 = vpow2.f32 %v803_v43 }
 0x581   :  { %v811_v22 = vmul.f32 1.442695, %v796_v42 }
 0x582   :  { %v3555_v17 = vpop.permute.xlu0 %3554 }
 0x583   :  { %v3557_v62 = vunpack.i.h.bf16 %v3555_v17  ;;  %v3556_v32 = vunpack.i.l.bf16 %v3555_v17 }
 0x585   :  { %v4191_v15 = vpop.eup %3686  ;;  %v3344_v30 = vpack.c.bf16 %v3557_v62, %v3556_v32 }
 0x586   :  { %v819_v35 = vsel %vm354_vm3, %v4191_v15, 0.0 }
 0x587   :  { %820 = vadd.xlane.f32.xlu0 %v819_v35  ;;  %3345 = vmatprep.subr.bf16.mxu1 %v3344_v30 }
 0x588   :  { %3347 = vmatpush3.bf16.msra.mxu1 %v3344_v30 }
 0x589   :  { %v4195_v37 = vpop.eup %3688 }
 0x58a   :  { %v828_v2 = vsel %vm354_vm3, %v4195_v37, 0.0  ;;  %v4203_v5 = vpop.eup %3690 }
 0x58b   :  { %829 = vadd.xlane.f32.xlu0 %v828_v2 }
 0x590   :  { %3569 = vrot.lane.b32.xlu1 %v3916_v19, %s3793_s16 }
 0x5a2   :  { %v779_v44 = vpop.xlane.xlu1 %778 }
 0x5a3   :  { %v793_v46 = vsub.f32 %v747_v39, %v779_v44  ;;  %v822_v39 = vsel %vm354_vm3, %v4203_v5, 0.0 }
 0x5a5   :  { %v805_v45 = vmul.f32 1.442695, %v793_v46 }
 0x5a6   :  { %v3560_v11 = vpop.permute.xlu1 %3559 }
 0x5a7   :  { %3692 = vpow2.f32 %v805_v45  ;;  %v3562_v47 = vunpack.i.h.bf16 %v3560_v11  ;;  %v3561_v48 = vunpack.i.l.bf16 %v3560_v11 }
 0x5a8   :  { %3694 = vpow2.f32 %v811_v22 }
 0x5a9   :  { %v3348_v54 = vpack.c.bf16 %v3562_v47, %v3561_v48 }
 0x5ab   :  { %3349 = vmatprep.subr.bf16.mxu1 %v3348_v54 }
 0x5ac   :  { %3351 = vmatpush3.bf16.msra.mxu1 %v3348_v54 }
 0x5b1   :  { %v4205_v7 = vpop.eup %3692 }
 0x5b2   :  { %v825_v12 = vsel %vm354_vm3, %v4205_v7, 0.0  ;;  %v4209_v36 = vpop.eup %3694 }
 0x5b3   :  { %826 = vadd.xlane.f32.xlu0 %v825_v12  ;;  %v834_v51 = vsel %vm354_vm3, %v4209_v36, 0.0 }
 0x5b4   :  { %823 = vadd.xlane.f32.xlu1 %v822_v39 }
 0x5b7   :  { %835 = vadd.xlane.f32.xlu0 %v834_v51 }
 0x5c5   :  { %3579 = vrot.lane.b32.xlu1 %v3934_v29, %s3793_s16 }
 0x5c9   :  { %3584 = vrot.lane.b32.xlu1 %v3943_v34, %s3793_s16 }
 0x5cd   :  { %1006 = vrot.lane.b32.xlu1 %v3910_v18, %s3794_s17 }
 0x5d1   :  { %1008 = vrot.lane.b32.xlu1 %v3908_v16, %s3794_s17 }
 0x5d5   :  { %1012 = vrot.lane.b32.xlu1 %v3918_v21, %s3794_s17 }
 0x5d7   :  { %v785_v49 = vpop.xlane.xlu1 %784 }
 0x5d8   :  { %v795_v8 = vsub.f32 %v4178_v40, %v785_v49 }
 0x5d9   :  { %1016 = vrot.lane.b32.xlu1 %v3927_v26, %s3794_s17 }
 0x5da   :  { %v809_v10 = vmul.f32 1.442695, %v795_v8 }
 0x5db   :  { %v3565_v61 = vpop.permute.xlu1 %3564 }
 0x5dc   :  { %3696 = vpow2.f32 %v809_v10  ;;  %v3567_v13 = vunpack.i.h.bf16 %v3565_v61  ;;  %v3566_v25 = vunpack.i.l.bf16 %v3565_v61 }
 0x5dd   :  { %1020 = vrot.lane.b32.xlu1 %v3936_v31, %s3794_s17 }
 0x5de   :  { %v3352_v27 = vpack.c.bf16 %v3567_v13, %v3566_v25 }
 0x5e0   :  { %3353 = vmatprep.subr.bf16.mxu1 %v3352_v27 }
 0x5e1   :  { %3355 = vmatpush3.bf16.msra.mxu1 %v3352_v27 }
 0x5e6   :  { %v3697_v17 = vpop.eup %3696 }
 0x5e7   :  { %v831_v62 = vsel %vm354_vm3, %v3697_v17, 0.0 }
 0x5e8   :  { %832 = vadd.xlane.f32.xlu0 %v831_v62 }
 0x5fe   :  { %3574 = vrot.lane.b32.xlu0 %v3925_v24, %s3793_s16 }
 0x602   :  { %1010 = vrot.lane.b32.xlu0 %v3921_v23, %s3794_s17 }
 0x606   :  { %1014 = vrot.lane.b32.xlu0 %v3930_v28, %s3794_s17 }
 0x60a   :  { %1018 = vrot.lane.b32.xlu0 %v3939_v33, %s3794_s17 }
 0x60b   :  { %v818_v40 = vpop.xlane.xlu0 %817 }
 0x60c   :  { %3698 = vrcp.f32 %v818_v40  ;;  %v815_v32 = vpop.xlane.xlu1 %814 }
 0x60d   :  { %3700 = vrcp.f32 %v815_v32 }
 0x610   :  { %v3570_v30 = vpop.permute.xlu1 %3569 }
 0x611   :  { %v3572_v35 = vunpack.i.h.bf16 %v3570_v30  ;;  %v3571_v2 = vunpack.i.l.bf16 %v3570_v30 }
 0x613   :  { %v3356_v41 = vpack.c.bf16 %v3572_v35, %v3571_v2 }
 0x614   :  { %v821_v42 = vpop.xlane.xlu0 %820 }
 0x615   :  { %3702 = vrcp.f32 %v821_v42  ;;  %3358 = vmatprep.subr.msk.bf16.mxu1 %vm3948_vm2, %v3356_v41 }
 0x616   :  { %v3699_v43 = vpop.eup %3698 }
 0x617   :  { %v3701_v44 = vpop.eup %3700  ;;  %v846_v22 = vmul.f32 %v3699_v43, %v4183_v6 }
 0x618   :  { %v845_v46 = vmul.f32 %v3701_v44, %v4185_v50  ;;  %v830_v47 = vpop.xlane.xlu0 %829 }
 0x61a   :  { %3058 = vmatprep.mubr.msk.f32.mxu1 %vm354_vm3, %v845_v46 }
 0x61b   :  { %3059 = vmatmul.mubr.msk.f32.vlgmr.msra.gmra.mrb[8].mxu1 %vm354_vm3, %v846_v22 }
 0x61c   :  { %3361 = vmatpush3.bf16.xpose.msk.msra.mxu1 %vm3948_vm2, %v3356_v41 }
 0x61f   :  { %v3703_v45 = vpop.eup %3702 }
 0x620   :  { %v847_v11 = vmul.f32 %v3703_v45, %v4191_v15 }
 0x622   :  { %3061 = vmatprep.mubr.msk.f32.mxu1 %vm354_vm3, %v847_v11 }
 0x640   :  { %v827_v48 = vpop.xlane.xlu0 %826 }
 0x641   :  { %3704 = vrcp.f32 %v827_v48  ;;  %v824_v54 = vpop.xlane.xlu1 %823 }
 0x642   :  { %3706 = vrcp.f32 %v824_v54 }
 0x643   :  { %3708 = vrcp.f32 %v830_v47 }
 0x644   :  { %v836_v49 = vpop.xlane.xlu0 %835 }
 0x645   :  { %3710 = vrcp.f32 %v836_v49  ;;  %v3580_v10 = vpop.permute.xlu1 %3579 }
 0x646   :  { %v3582_v13 = vunpack.i.h.bf16 %v3580_v10  ;;  %v3581_v25 = vunpack.i.l.bf16 %v3580_v10 }
 0x649   :  { %v3585_v40 = vpop.permute.xlu1 %3584 }
 0x64a   :  { %v3587_v35 = vunpack.i.h.bf16 %v3585_v40  ;;  %v3586_v2 = vunpack.i.l.bf16 %v3585_v40 }
 0x64b   :  { %v3705_v50 = vpop.eup %3704 }
 0x64c   :  { %v3707_v6 = vpop.eup %3706  ;;  %v849_v51 = vmul.f32 %v3705_v50, %v4205_v7  ;;  %v3368_v7 = vpack.c.bf16 %v3582_v13, %v3581_v25  ;;  %v3374_v43 = vpack.c.bf16 %v3587_v35, %v3586_v2 }
 0x64d   :  { %v848_v12 = vmul.f32 %v3707_v6, %v4203_v5  ;;  %v3709_v39 = vpop.eup %3708  ;;  %v1007_v42 = vpop.permute.xlu1 %1006 }
 0x64e   :  { %v850_v15 = vmul.f32 %v3709_v39, %v4195_v37 }
 0x64f   :  { %3062 = vmatmul.mubr.msk.f32.gmra.mrb[10].mxu1 %vm354_vm3, %v848_v12  ;;  %v3711_v32 = vpop.eup %3710 }
 0x650   :  { %3064 = vmatprep.mubr.msk.f32.mxu1 %vm354_vm3, %v849_v51  ;;  %v852_v41 = vmul.f32 %v3711_v32, %v4209_v36 }
 0x651   :  { %v1009_v44 = vpop.permute.xlu1 %1008 }
 0x653   :  { %3065 = vmatmul.mubr.msk.f32.gmra.mrb[12].mxu1 %vm354_vm3, %v850_v15 }
 0x655   :  { %v1013_v36 = vpop.permute.xlu1 %1012 }
 0x659   :  { %v1017_v22 = vpop.permute.xlu1 %1016 }
 0x65d   :  { %v1021_v11 = vpop.permute.xlu1 %1020 }
 0x675   :  { %v833_v8 = vpop.xlane.xlu0 %832 }
 0x676   :  { %3712 = vrcp.f32 %v833_v8 }
 0x679   :  { %v3575_v61 = vpop.permute.xlu0 %3574 }
 0x67a   :  { %v3577_v5 = vunpack.i.h.bf16 %v3575_v61  ;;  %v3576_v27 = vunpack.i.l.bf16 %v3575_v61 }
 0x67c   :  { %v3362_v62 = vpack.c.bf16 %v3577_v5, %v3576_v27 }
 0x67e   :  { %3364 = vmatprep.subr.msk.bf16.mxu1 %vm3948_vm2, %v3362_v62 }
 0x67f   :  { %3367 = vmatpush3.bf16.xpose.msk.msra.mxu1 %vm3948_vm2, %v3362_v62 }
 0x680   :  { %v3713_v37 = vpop.eup %3712  ;;  %3370 = vmatprep.subr.msk.bf16.mxu1 %vm3948_vm2, %v3368_v7 }
 0x681   :  { %v851_v30 = vmul.f32 %v3713_v37, %v3697_v17  ;;  %v1011_v17 = vpop.permute.xlu0 %1010 }
 0x683   :  { %3067 = vmatprep.mubr.msk.f32.mxu1 %vm354_vm3, %v851_v30 }
 0x684   :  { %3068 = vmatmul.mubr.msk.f32.gmra.mrb[14].mxu1 %vm354_vm3, %v852_v41 }
 0x685   :  { %3086 = vmatprep.mubr.msk.f32.mxu1 %vm216_vm1, %v1007_v42  ;;  %v1015_v46 = vpop.permute.xlu0 %1014 }
 0x687   :  { %3373 = vmatpush3.bf16.xpose.msk.msra.mxu1 %vm3948_vm2, %v3368_v7 }
 0x688   :  { %3376 = vmatprep.subr.msk.bf16.mxu1 %vm3948_vm2, %v3374_v43 }
 0x689   :  { %v1019_v45 = vpop.permute.xlu0 %1018 }
 0x68f   :  { %3379 = vmatpush3.bf16.xpose.msk.msra.mxu1 %vm3948_vm2, %v3374_v43 }
 0x696   :  { %3087 = vmatmul.mubr.msk.f32.vlgmr.msra.gmra.mrb[16].mxu1 %vm216_vm1, %v1009_v44 }
 0x697   :  { %3089 = vmatprep.mubr.msk.f32.mxu1 %vm216_vm1, %v1011_v17 }
 0x69a   :  { %3090 = vmatmul.mubr.msk.f32.gmra.mrb[18].mxu1 %vm216_vm1, %v1013_v36 }
 0x69b   :  { %3092 = vmatprep.mubr.msk.f32.mxu1 %vm216_vm1, %v1015_v46 }
 0x69e   :  { %3093 = vmatmul.mubr.msk.f32.gmra.mrb[20].mxu1 %vm216_vm1, %v1017_v22 }
 0x69f   :  { %3095 = vmatprep.mubr.msk.f32.mxu1 %vm216_vm1, %v1019_v45 }
 0x6a2   :  { %3096 = vmatmul.mubr.msk.f32.gmra.mrb[22].mxu1 %vm216_vm1, %v1021_v11 }
 0x6ee   :  { %v4270_v47 = vpop.f32.mrb[8].mxu1 }
 0x6ef   :  { %v4272_v48 = vpop.f32.mrb[9].mxu1 }
 0x722   :  { %v4274_v54 = vpop.f32.mrb[10].mxu1 }
 0x723   :  { %v4276_v50 = vpop.f32.mrb[11].mxu1 }
 0x726   :  { %v4278_v6 = vpop.f32.mrb[12].mxu1 }
 0x727   :  { %v4280_v12 = vpop.f32.mrb[13].mxu1 }
 0x757   :  { %v4282_v39 = vpop.f32.mrb[14].mxu1 }
 0x758   :  { %v4284_v51 = vpop.f32.mrb[15].mxu1 }
 0x769   :  { %v3088_v15 = vpop.f32.mrb[16].mxu1 }
 0x76a   :  { %v1142_v49 = vadd.f32 %v3088_v15, %v3985_v52  ;;  %v1136_v8 = vpop.f32.mrb[17].mxu1 }
 0x76b   :  { %v1137_v10 = vadd.f32 %v1136_v8, %v3990_v53 }
 0x76c   :  { %v1178_v61 = vsel %vm354_vm3, %v1142_v49, -inf }
 0x76d   :  { %1179 = vmax.xlane.f32.xlu1 %v1178_v61  ;;  %v3091_v13 = vpop.f32.mrb[18].mxu1  ;;  %v1175_v25 = vsel %vm354_vm3, %v1137_v10, -inf }
 0x76e   :  { %v4291_v5 = vadd.f32 %v3091_v13, %v3997_v58  ;;  %v1146_v27 = vpop.f32.mrb[19].mxu1  ;;  %1176 = vmax.xlane.f32.xlu0 %v1175_v25 }
 0x76f   :  { %v1147_v7 = vadd.f32 %v1146_v27, %v4007_v0 }
 0x770   :  { %v1184_v62 = vsel %vm354_vm3, %v4291_v5, -inf }
 0x771   :  { %v3094_v52 = vpop.f32.mrb[20].mxu1  ;;  %v1181_v37 = vsel %vm354_vm3, %v1147_v7, -inf }
 0x772   :  { %v1156_v40 = vpop.f32.mrb[21].mxu1  ;;  %1185 = vmax.xlane.f32.xlu0 %v1184_v62  ;;  %v1162_v53 = vadd.f32 %v3094_v52, %v4015_v4 }
 0x773   :  { %v1157_v0 = vadd.f32 %v1156_v40, %v4035_v14 }
 0x774   :  { %v1190_v35 = vsel %vm354_vm3, %v1162_v53, -inf }
 0x775   :  { %v3097_v32 = vpop.f32.mrb[22].mxu1  ;;  %v1187_v4 = vsel %vm354_vm3, %v1157_v0, -inf }
 0x776   :  { %v1166_v30 = vpop.f32.mrb[23].mxu1  ;;  %1182 = vmax.xlane.f32.xlu0 %v1181_v37  ;;  %v4299_v58 = vadd.f32 %v3097_v32, %v4022_v9 }
 0x777   :  { %v4310_v9 = vadd.f32 %v1166_v30, %v4043_v20 }
 0x778   :  { %v1196_v2 = vsel %vm354_vm3, %v4299_v58, -inf }
 0x779   :  { %v1193_v41 = vsel %vm354_vm3, %v4310_v9, -inf }
 0x77a   :  { %1191 = vmax.xlane.f32.xlu0 %v1190_v35 }
 0x77e   :  { %3589 = vrot.lane.b32.xlu1 %v3916_v19, %s3795_s0  ;;  %1197 = vmax.xlane.f32.xlu0 %v1196_v2 }
 0x794   :  { %3594 = vrot.lane.b32.xlu0 %v3925_v24, %s3795_s0 }
 0x7a2   :  { %1188 = vmax.xlane.f32.xlu1 %v1187_v4 }
 0x7b3   :  { %3599 = vrot.lane.b32.xlu1 %v3934_v29, %s3795_s0 }
 0x7d7   :  { %1194 = vmax.xlane.f32.xlu1 %v1193_v41 }
 0x7e8   :  { %3604 = vrot.lane.b32.xlu1 %v3943_v34, %s3795_s0 }
 0x7fa   :  { %v1180_v42 = vpop.xlane.xlu1 %1179 }
 0x7fb   :  { %v1200_v43 = vsub.f32 %v1142_v49, %v1180_v42  ;;  %v1177_v44 = vpop.xlane.xlu0 %1176 }
 0x7fc   :  { %v1199_v17 = vsub.f32 %v1137_v10, %v1177_v44 }
 0x7fd   :  { %v1209_v36 = vmul.f32 1.442695, %v1200_v43 }
 0x7fe   :  { %v1207_v14 = vmul.f32 1.442695, %v1199_v17  ;;  %v3590_v46 = vpop.permute.xlu1 %3589 }
 0x7ff   :  { %3714 = vpow2.f32 %v1209_v36  ;;  %v3592_v22 = vunpack.i.h.bf16 %v3590_v46  ;;  %v3591_v45 = vunpack.i.l.bf16 %v3590_v46  ;;  %v1186_v11 = vpop.xlane.xlu0 %1185 }
 0x800   :  { %3716 = vpow2.f32 %v1207_v14  ;;  %v1202_v41 = vsub.f32 %v4291_v5, %v1186_v11 }
 0x801   :  { %v3380_v20 = vpack.c.bf16 %v3592_v22, %v3591_v45 }
 0x802   :  { %v1213_v43 = vmul.f32 1.442695, %v1202_v41 }
 0x803   :  { %3381 = vmatprep.subr.bf16.mxu0 %v3380_v20  ;;  %v1183_v15 = vpop.xlane.xlu0 %1182 }
 0x804   :  { %v1201_v8 = vsub.f32 %v1147_v7, %v1183_v15  ;;  %3383 = vmatpush3.bf16.msra.mxu0 %v3380_v20 }
 0x806   :  { %v1211_v61 = vmul.f32 1.442695, %v1201_v8 }
 0x807   :  { %v1192_v13 = vpop.xlane.xlu0 %1191 }
 0x808   :  { %3718 = vpow2.f32 %v1211_v61  ;;  %v1204_v25 = vsub.f32 %v1162_v53, %v1192_v13 }
 0x809   :  { %v4315_v49 = vpop.eup %3714 }
 0x80a   :  { %v4317_v10 = vpop.eup %3716  ;;  %v1217_v27 = vmul.f32 1.442695, %v1204_v25  ;;  %v1226_v62 = vsel %vm354_vm3, %v4315_v49, 0.0 }
 0x80b   :  { %1227 = vadd.xlane.f32.xlu0 %v1226_v62  ;;  %v1198_v52 = vpop.xlane.xlu0 %1197  ;;  %v1223_v40 = vsel %vm354_vm3, %v4317_v10, 0.0 }
 0x80c   :  { %3720 = vpow2.f32 %v1217_v27  ;;  %1224 = vadd.xlane.f32.xlu1 %v1223_v40  ;;  %v1206_v42 = vsub.f32 %v4299_v58, %v1198_v52 }
 0x80d   :  { %3722 = vpow2.f32 %v1213_v43 }
 0x80e   :  { %v1221_v36 = vmul.f32 1.442695, %v1206_v42 }
 0x80f   :  { %v3595_v7 = vpop.permute.xlu0 %3594 }
 0x810   :  { %v3597_v32 = vunpack.i.h.bf16 %v3595_v7  ;;  %v3596_v37 = vunpack.i.l.bf16 %v3595_v7 }
 0x812   :  { %v4323_v30 = vpop.eup %3718  ;;  %v3384_v53 = vpack.c.bf16 %v3597_v32, %v3596_v37 }
 0x813   :  { %v1229_v35 = vsel %vm354_vm3, %v4323_v30, 0.0 }
 0x814   :  { %1230 = vadd.xlane.f32.xlu0 %v1229_v35  ;;  %3385 = vmatprep.subr.bf16.mxu0 %v3384_v53 }
 0x815   :  { %3387 = vmatpush3.bf16.msra.mxu0 %v3384_v53 }
 0x816   :  { %v4327_v2 = vpop.eup %3720 }
 0x817   :  { %v1238_v4 = vsel %vm354_vm3, %v4327_v2, 0.0  ;;  %v4335_v15 = vpop.eup %3722 }
 0x818   :  { %1239 = vadd.xlane.f32.xlu0 %v1238_v4 }
 0x81d   :  { %3609 = vrot.lane.b32.xlu1 %v3916_v19, %s3796_s2 }
 0x82f   :  { %v1189_v44 = vpop.xlane.xlu1 %1188 }
 0x830   :  { %v1203_v17 = vsub.f32 %v1157_v0, %v1189_v44  ;;  %v1232_v0 = vsel %vm354_vm3, %v4335_v15, 0.0 }
 0x832   :  { %v1215_v14 = vmul.f32 1.442695, %v1203_v17 }
 0x833   :  { %v3600_v46 = vpop.permute.xlu1 %3599 }
 0x834   :  { %3724 = vpow2.f32 %v1215_v14  ;;  %v3602_v22 = vunpack.i.h.bf16 %v3600_v46  ;;  %v3601_v45 = vunpack.i.l.bf16 %v3600_v46 }
 0x835   :  { %3726 = vpow2.f32 %v1221_v36 }
 0x836   :  { %v3388_v20 = vpack.c.bf16 %v3602_v22, %v3601_v45 }
 0x838   :  { %3389 = vmatprep.subr.bf16.mxu0 %v3388_v20 }
 0x839   :  { %3391 = vmatpush3.bf16.msra.mxu0 %v3388_v20 }
 0x83e   :  { %v4337_v8 = vpop.eup %3724 }
 0x83f   :  { %v1235_v5 = vsel %vm354_vm3, %v4337_v8, 0.0  ;;  %v4341_v58 = vpop.eup %3726 }
 0x840   :  { %1236 = vadd.xlane.f32.xlu0 %v1235_v5  ;;  %v1244_v11 = vsel %vm354_vm3, %v4341_v58, 0.0 }
 0x841   :  { %1233 = vadd.xlane.f32.xlu1 %v1232_v0 }
 0x844   :  { %1245 = vadd.xlane.f32.xlu0 %v1244_v11 }
 0x852   :  { %3619 = vrot.lane.b32.xlu1 %v3934_v29, %s3796_s2 }
 0x856   :  { %3624 = vrot.lane.b32.xlu1 %v3943_v34, %s3796_s2 }
 0x85a   :  { %1416 = vrot.lane.b32.xlu1 %v3910_v18, %s3797_s18 }
 0x85e   :  { %1418 = vrot.lane.b32.xlu1 %v3908_v16, %s3797_s18 }
 0x862   :  { %1422 = vrot.lane.b32.xlu1 %v3918_v21, %s3797_s18 }
 0x864   :  { %v1195_v61 = vpop.xlane.xlu1 %1194 }
 0x865   :  { %v1205_v13 = vsub.f32 %v4310_v9, %v1195_v61 }
 0x866   :  { %1426 = vrot.lane.b32.xlu1 %v3927_v26, %s3797_s18 }
 0x867   :  { %v1219_v25 = vmul.f32 1.442695, %v1205_v13 }
 0x868   :  { %v3605_v27 = vpop.permute.xlu1 %3604 }
 0x869   :  { %3728 = vpow2.f32 %v1219_v25  ;;  %v3607_v62 = vunpack.i.h.bf16 %v3605_v27  ;;  %v3606_v52 = vunpack.i.l.bf16 %v3605_v27 }
 0x86a   :  { %1430 = vrot.lane.b32.xlu1 %v3936_v31, %s3797_s18 }
 0x86b   :  { %v3392_v40 = vpack.c.bf16 %v3607_v62, %v3606_v52 }
 0x86d   :  { %3393 = vmatprep.subr.bf16.mxu0 %v3392_v40 }
 0x86e   :  { %3395 = vmatpush3.bf16.msra.mxu0 %v3392_v40 }
 0x873   :  { %v3729_v18 = vpop.eup %3728 }
 0x874   :  { %v1241_v16 = vsel %vm354_vm3, %v3729_v18, 0.0 }
 0x875   :  { %1242 = vadd.xlane.f32.xlu0 %v1241_v16 }
 0x88b   :  { %3614 = vrot.lane.b32.xlu0 %v3925_v24, %s3796_s2 }
 0x88f   :  { %1420 = vrot.lane.b32.xlu0 %v3921_v23, %s3797_s18 }
 0x893   :  { %1424 = vrot.lane.b32.xlu0 %v3930_v28, %s3797_s18 }
 0x897   :  { %1428 = vrot.lane.b32.xlu0 %v3939_v33, %s3797_s18 }
 0x898   :  { %v1228_v21 = vpop.xlane.xlu0 %1227 }
 0x899   :  { %3730 = vrcp.f32 %v1228_v21  ;;  %v1225_v26 = vpop.xlane.xlu1 %1224 }
 0x89a   :  { %3732 = vrcp.f32 %v1225_v26 }
 0x89d   :  { %v3610_v31 = vpop.permute.xlu1 %3609 }
 0x89e   :  { %v3612_v9 = vunpack.i.h.bf16 %v3610_v31  ;;  %v3611_v7 = vunpack.i.l.bf16 %v3610_v31 }
 0x8a0   :  { %v3396_v32 = vpack.c.bf16 %v3612_v9, %v3611_v7 }
 0x8a1   :  { %v1231_v37 = vpop.xlane.xlu0 %1230 }
 0x8a2   :  { %3734 = vrcp.f32 %v1231_v37  ;;  %3398 = vmatprep.subr.msk.bf16.mxu0 %vm3948_vm2, %v3396_v32 }
 0x8a3   :  { %v3731_v53 = vpop.eup %3730 }
 0x8a4   :  { %v3733_v35 = vpop.eup %3732  ;;  %v1256_v28 = vmul.f32 %v3731_v53, %v4315_v49 }
 0x8a5   :  { %v1255_v23 = vmul.f32 %v3733_v35, %v4317_v10  ;;  %v1240_v41 = vpop.xlane.xlu0 %1239 }
 0x8a7   :  { %3114 = vmatprep.mubr.msk.f32.mxu0 %vm354_vm3, %v1255_v23 }
 0x8a8   :  { %3115 = vmatmul.mubr.msk.f32.vlgmr.msra.gmra.mrb[24].mxu0 %vm354_vm3, %v1256_v28 }
 0x8a9   :  { %3401 = vmatpush3.bf16.xpose.msk.msra.mxu0 %vm3948_vm2, %v3396_v32 }
 0x8ac   :  { %v3735_v33 = vpop.eup %3734 }
 0x8ad   :  { %v1257_v4 = vmul.f32 %v3735_v33, %v4323_v30 }
 0x8af   :  { %3117 = vmatprep.mubr.msk.f32.mxu0 %vm354_vm3, %v1257_v4 }
 0x8cd   :  { %v1237_v42 = vpop.xlane.xlu0 %1236 }
 0x8ce   :  { %3736 = vrcp.f32 %v1237_v42  ;;  %v1234_v43 = vpop.xlane.xlu1 %1233 }
 0x8cf   :  { %3738 = vrcp.f32 %v1234_v43 }
 0x8d0   :  { %3740 = vrcp.f32 %v1240_v41  ;;  %v3780_v41 = vld [vmem:[%s4711_s5 + $0x8] sm:$0xff] }
 0x8d1   :  { %v1246_v14 = vpop.xlane.xlu0 %1245 }
 0x8d2   :  { %3742 = vrcp.f32 %v1246_v14  ;;  %v3620_v22 = vpop.permute.xlu1 %3619  ;;  %v3782_v14 = vld [vmem:[%s4711_s5 + $0x10] sm:$0xff] }
 0x8d3   :  { %v3622_v20 = vunpack.i.h.bf16 %v3620_v22  ;;  %v3621_v5 = vunpack.i.l.bf16 %v3620_v22  ;;  %v3783_v22 = vld [vmem:[%s4711_s5 + $0x18] sm:$0xff] }
 0x8d6   :  { %v3625_v61 = vpop.permute.xlu1 %3624 }
 0x8d7   :  { %v3627_v27 = vunpack.i.h.bf16 %v3625_v61  ;;  %v3626_v62 = vunpack.i.l.bf16 %v3625_v61 }
 0x8d8   :  { %v3737_v10 = vpop.eup %3736 }
 0x8d9   :  { %v3739_v49 = vpop.eup %3738  ;;  %v1259_v36 = vmul.f32 %v3737_v10, %v4337_v8  ;;  %v3408_v8 = vpack.c.bf16 %v3622_v20, %v3621_v5  ;;  %v3414_v16 = vpack.c.bf16 %v3627_v27, %v3626_v62  ;;  %v3781_v10 = vld [vmem:[%s4711_s5] sm:$0xff]  ;;  %v3786_v62 = vld [vmem:[%s4711_s5 + $0x30] sm:$0xff] }
 0x8da   :  { %v1258_v44 = vmul.f32 %v3739_v49, %v4335_v15  ;;  %v3741_v17 = vpop.eup %3740  ;;  %v1417_v40 = vpop.permute.xlu1 %1416 }
 0x8db   :  { %v1260_v30 = vmul.f32 %v3741_v17, %v4327_v2 }
 0x8dc   :  { %3118 = vmatmul.mubr.msk.f32.gmra.mrb[26].mxu0 %vm354_vm3, %v1258_v44  ;;  %v3743_v13 = vpop.eup %3742 }
 0x8dd   :  { %3120 = vmatprep.mubr.msk.f32.mxu0 %vm354_vm3, %v1259_v36  ;;  %v1262_v52 = vmul.f32 %v3743_v13, %v4341_v58 }
 0x8de   :  { %v1419_v21 = vpop.permute.xlu1 %1418 }
 0x8e0   :  { %3121 = vmatmul.mubr.msk.f32.gmra.mrb[28].mxu0 %vm354_vm3, %v1260_v30 }
 0x8e2   :  { %v1423_v58 = vpop.permute.xlu1 %1422 }
 0x8e6   :  { %v1427_v31 = vpop.permute.xlu1 %1426 }
 0x8ea   :  { %v1431_v7 = vpop.permute.xlu1 %1430 }
 0x902   :  { %v1243_v46 = vpop.xlane.xlu0 %1242 }
 0x903   :  { %3744 = vrcp.f32 %v1243_v46 }
 0x906   :  { %v3615_v45 = vpop.permute.xlu0 %3614 }
 0x907   :  { %v3617_v15 = vunpack.i.h.bf16 %v3615_v45  ;;  %v3616_v0 = vunpack.i.l.bf16 %v3615_v45 }
 0x909   :  { %v3402_v11 = vpack.c.bf16 %v3617_v15, %v3616_v0  ;;  %v3784_v0 = vld [vmem:[%s4711_s5 + $0x20] sm:$0xff] }
 0x90b   :  { %3404 = vmatprep.subr.msk.bf16.mxu0 %vm3948_vm2, %v3402_v11 }
 0x90c   :  { %3407 = vmatpush3.bf16.xpose.msk.msra.mxu0 %vm3948_vm2, %v3402_v11 }
 0x90d   :  { %v3745_v2 = vpop.eup %3744  ;;  %3410 = vmatprep.subr.msk.bf16.mxu0 %vm3948_vm2, %v3408_v8 }
 0x90e   :  { %v1261_v25 = vmul.f32 %v3745_v2, %v3729_v18  ;;  %v1421_v18 = vpop.permute.xlu0 %1420 }
 0x910   :  { %3123 = vmatprep.mubr.msk.f32.mxu0 %vm354_vm3, %v1261_v25 }
 0x911   :  { %3124 = vmatmul.mubr.msk.f32.gmra.mrb[30].mxu0 %vm354_vm3, %v1262_v52 }
 0x912   :  { %3142 = vmatprep.mubr.msk.f32.mxu0 %vm216_vm1, %v1417_v40  ;;  %v1425_v26 = vpop.permute.xlu0 %1424  ;;  %v3787_v40 = vld [vmem:[%s4711_s5 + $0x38] sm:$0xff] }
 0x914   :  { %3413 = vmatpush3.bf16.xpose.msk.msra.mxu0 %vm3948_vm2, %v3408_v8  ;;  %v3785_v8 = vld [vmem:[%s4711_s5 + $0x28] sm:$0xff]  ;;  %s3799_s5 = smov 8  }
 0x915   :  { %3416 = vmatprep.subr.msk.bf16.mxu0 %vm3948_vm2, %v3414_v16 }
 0x916   :  { %v1429_v9 = vpop.permute.xlu0 %1428 }
 0x91c   :  { %3419 = vmatpush3.bf16.xpose.msk.msra.mxu0 %vm3948_vm2, %v3414_v16 }
 0x923   :  { %3143 = vmatmul.mubr.msk.f32.vlgmr.msra.gmra.mrb[32].mxu0 %vm216_vm1, %v1419_v21 }
 0x924   :  { %3145 = vmatprep.mubr.msk.f32.mxu0 %vm216_vm1, %v1421_v18 }
 0x927   :  { %3146 = vmatmul.mubr.msk.f32.gmra.mrb[34].mxu0 %vm216_vm1, %v1423_v58 }
 0x928   :  { %3148 = vmatprep.mubr.msk.f32.mxu0 %vm216_vm1, %v1425_v26 }
 0x92b   :  { %3149 = vmatmul.mubr.msk.f32.gmra.mrb[36].mxu0 %vm216_vm1, %v1427_v31 }
 0x92c   :  { %3151 = vmatprep.mubr.msk.f32.mxu0 %vm216_vm1, %v1429_v9 }
 0x92f   :  { %3152 = vmatmul.mubr.msk.f32.gmra.mrb[38].mxu0 %vm216_vm1, %v1431_v7 }
 0x97b   :  { %v4402_v38 = vpop.f32.mrb[24].mxu0 }
 0x97c   :  { %v4404_v32 = vpop.f32.mrb[25].mxu0 }
 0x9af   :  { %v4406_v37 = vpop.f32.mrb[26].mxu0 }
 0x9b0   :  { %v4408_v53 = vpop.f32.mrb[27].mxu0 }
 0x9b3   :  { %v4410_v35 = vpop.f32.mrb[28].mxu0 }
 0x9b4   :  { %v4412_v23 = vpop.f32.mrb[29].mxu0 }
 0x9e4   :  { %v4414_v28 = vpop.f32.mrb[30].mxu0 }
 0x9e5   :  { %v4416_v33 = vpop.f32.mrb[31].mxu0 }
 0x9f6   :  { %v3144_v4 = vpop.f32.mrb[32].mxu0 }
 0x9f7   :  { %v1552_v42 = vadd.f32 %v3780_v41, %v3144_v4  ;;  %v1546_v43 = vpop.f32.mrb[33].mxu0 }
 0x9f8   :  { %v1547_v49 = vadd.f32 %v3781_v10, %v1546_v43 }
 0x9f9   :  { %v1588_v44 = vsel %vm354_vm3, %v1552_v42, -inf }
 0x9fa   :  { %1589 = vmax.xlane.f32.xlu1 %v1588_v44  ;;  %v3147_v17 = vpop.f32.mrb[34].mxu0  ;;  %v1585_v36 = vsel %vm354_vm3, %v1547_v49, -inf }
 0x9fb   :  { %v1556_v30 = vpop.f32.mrb[35].mxu0  ;;  %1586 = vmax.xlane.f32.xlu0 %v1585_v36  ;;  %v1562_v45 = vadd.f32 %v3783_v22, %v3147_v17 }
 0x9fc   :  { %v1557_v46 = vadd.f32 %v3782_v14, %v1556_v30 }
 0x9fd   :  { %v1594_v25 = vsel %vm354_vm3, %v1562_v45, -inf }
 0x9fe   :  { %v3150_v20 = vpop.f32.mrb[36].mxu0  ;;  %v1591_v5 = vsel %vm354_vm3, %v1557_v46, -inf }
 0x9ff   :  { %v1566_v15 = vpop.f32.mrb[37].mxu0  ;;  %1592 = vmax.xlane.f32.xlu0 %v1591_v5  ;;  %v1572_v61 = vadd.f32 %v3785_v8, %v3150_v20 }
 0xa00   :  { %v1567_v11 = vadd.f32 %v3784_v0, %v1566_v15 }
 0xa01   :  { %v1600_v18 = vsel %vm354_vm3, %v1572_v61, -inf }
 0xa02   :  { %v3153_v13 = vpop.f32.mrb[38].mxu0  ;;  %v1597_v2 = vsel %vm354_vm3, %v1567_v11, -inf }
 0xa03   :  { %v1576_v27 = vpop.f32.mrb[39].mxu0  ;;  %1598 = vmax.xlane.f32.xlu1 %v1597_v2  ;;  %1595 = vmax.xlane.f32.xlu0 %v1594_v25  ;;  %v1582_v16 = vadd.f32 %v3787_v40, %v3153_v13 }
 0xa04   :  { %v1577_v52 = vadd.f32 %v3786_v62, %v1576_v27 }
 0xa05   :  { %v1606_v58 = vsel %vm354_vm3, %v1582_v16, -inf }
 0xa06   :  { %v1603_v21 = vsel %vm354_vm3, %v1577_v52, -inf }
 0xa07   :  { %1604 = vmax.xlane.f32.xlu1 %v1603_v21  ;;  %1601 = vmax.xlane.f32.xlu0 %v1600_v18 }
 0xa0b   :  { %1607 = vmax.xlane.f32.xlu0 %v1606_v58 }
 0xa18   :  { %3629 = vrot.lane.b32.xlu1 %v3916_v19, %s3798_s14 }
 0xa87   :  { %v1590_v26 = vpop.xlane.xlu1 %1589 }
 0xa88   :  { %v1610_v31 = vsub.f32 %v1552_v42, %v1590_v26  ;;  %v1587_v9 = vpop.xlane.xlu0 %1586 }
 0xa89   :  { %v1609_v7 = vsub.f32 %v1547_v49, %v1587_v9 }
 0xa8a   :  { %v1619_v4 = vmul.f32 1.442695, %v1610_v31 }
 0xa8b   :  { %v1617_v41 = vmul.f32 1.442695, %v1609_v7 }
 0xa8c   :  { %3746 = vpow2.f32 %v1619_v4  ;;  %v1593_v43 = vpop.xlane.xlu0 %1592 }
 0xa8d   :  { %3748 = vpow2.f32 %v1617_v41  ;;  %v1611_v10 = vsub.f32 %v1557_v46, %v1593_v43 }
 0xa8f   :  { %v1621_v44 = vmul.f32 1.442695, %v1611_v10 }
 0xa90   :  { %v1599_v17 = vpop.xlane.xlu1 %1598  ;;  %v1596_v36 = vpop.xlane.xlu0 %1595 }
 0xa91   :  { %3750 = vpow2.f32 %v1621_v44  ;;  %v1613_v30 = vsub.f32 %v1567_v11, %v1599_v17  ;;  %v1612_v14 = vsub.f32 %v1562_v45, %v1596_v36 }
 0xa93   :  { %v1625_v22 = vmul.f32 1.442695, %v1613_v30  ;;  %v1623_v20 = vmul.f32 1.442695, %v1612_v14 }
 0xa94   :  { %v1605_v5 = vpop.xlane.xlu1 %1604  ;;  %v1602_v19 = vpop.xlane.xlu0 %1601 }
 0xa95   :  { %3752 = vpow2.f32 %v1625_v22  ;;  %v1614_v42 = vsub.f32 %v1572_v61, %v1602_v19  ;;  %v1615_v8 = vsub.f32 %v1577_v52, %v1605_v5 }
 0xa96   :  { %v4452_v15 = vpop.eup %3746  ;;  %3754 = vpow2.f32 %v1623_v20 }
 0xa97   :  { %v4454_v49 = vpop.eup %3748  ;;  %v1627_v0 = vmul.f32 1.442695, %v1614_v42  ;;  %v1636_v46 = vsel %vm354_vm3, %v4452_v15, 0.0  ;;  %v1629_v21 = vmul.f32 1.442695, %v1615_v8 }
 0xa98   :  { %v3630_v13 = vpop.permute.xlu1 %3629  ;;  %1637 = vadd.xlane.f32.xlu0 %v1636_v46  ;;  %v1608_v11 = vpop.xlane.xlu0 %1607  ;;  %v1633_v45 = vsel %vm354_vm3, %v4454_v49, 0.0 }
 0xa99   :  { %v3632_v2 = vunpack.i.h.bf16 %v3630_v13  ;;  %v3631_v25 = vunpack.i.l.bf16 %v3630_v13  ;;  %v1616_v27 = vsub.f32 %v1582_v16, %v1608_v11  ;;  %1634 = vadd.xlane.f32.xlu1 %v1633_v45  ;;  %3756 = vpow2.f32 %v1627_v0  ;;  %v1948_v11 = vld [vmem:[%s4712_s3] sm:$0xff]  ;;  %v1949_v45 = vld [vmem:[%s4712_s3 + $0x8] sm:$0xff] }
 0xa9b   :  { %v4460_v61 = vpop.eup %3750  ;;  %v3420_v62 = vpack.c.bf16 %v3632_v2, %v3631_v25  ;;  %v1631_v40 = vmul.f32 1.442695, %v1616_v27  ;;  %v1950_v2 = vld [vmem:[%s4712_s3 + $0x10] sm:$0xff]  ;;  %v3436_v25 = vpack.c.bf16 %v1949_v45, %v1948_v11  ;;  %v1951_v27 = vld [vmem:[%s4712_s3 + $0x18] sm:$0xff]  ;;  %v3804_v11 = vmov 0.0  }
 0xa9c   :  { %v1639_v18 = vsel %vm354_vm3, %v4460_v61, 0.0  ;;  %3218 = vmatprep.mubr.msk.f32.mxu0 %vm3803_vm6, %v3804_v11 }
 0xa9d   :  { %3758 = vpow2.f32 %v1631_v40  ;;  %3421 = vmatprep.subr.bf16.mxu1 %v3420_v62  ;;  %1640 = vadd.xlane.f32.xlu1 %v1639_v18 }
 0xa9e   :  { %3423 = vmatpush3.bf16.msra.mxu1 %v3420_v62  ;;  %3760 = vpow2.f32 %v1629_v21 }
 0xa9f   :  { %v4464_v52 = vpop.eup %3752 }
 0xaa0   :  { %v4466_v58 = vpop.eup %3754  ;;  %v1645_v16 = vsel %vm354_vm3, %v4464_v52, 0.0 }
 0xaa1   :  { %1646 = vadd.xlane.f32.xlu1 %v1645_v16  ;;  %v1642_v26 = vsel %vm354_vm3, %v4466_v58, 0.0 }
 0xaa2   :  { %1643 = vadd.xlane.f32.xlu0 %v1642_v26 }
 0xaa3   :  { %v4472_v31 = vpop.eup %3756 }
 0xaa4   :  { %v1648_v9 = vsel %vm354_vm3, %v4472_v31, 0.0 }
 0xaa6   :  { %1649 = vadd.xlane.f32.xlu0 %v1648_v9 }
 0xaa7   :  { %v4476_v7 = vpop.eup %3758 }
 0xaa8   :  { %v1654_v4 = vsel %vm354_vm3, %v4476_v7, 0.0  ;;  %v4480_v41 = vpop.eup %3760 }
 0xaa9   :  { %v1651_v43 = vsel %vm354_vm3, %v4480_v41, 0.0 }
 0xaaa   :  { %1655 = vadd.xlane.f32.xlu0 %v1654_v4 }
 0xaae   :  { %1652 = vadd.xlane.f32.xlu0 %v1651_v43 }
 0xab2   :  { %3639 = vrot.lane.b32.xlu1 %v3934_v29, %s3798_s14 }
 0xab6   :  { %3644 = vrot.lane.b32.xlu1 %v3943_v34, %s3798_s14 }
 0xaba   :  { %1834 = vrot.lane.b32.xlu1 %v4272_v48, %s3799_s5 }
 0xabe   :  { %1836 = vrot.lane.b32.xlu1 %v4270_v47, %s3799_s5 }
 0xac2   :  { %1868 = vrot.lane.b32.xlu1 %v4402_v38, %s3800_s15 }
 0xac4   :  { %3634 = vrot.lane.b32.xlu0 %v3925_v24, %s3798_s14 }
 0xac6   :  { %1840 = vrot.lane.b32.xlu1 %v4274_v54, %s3799_s5 }
 0xac8   :  { %1866 = vrot.lane.b32.xlu0 %v4404_v32, %s3800_s15 }
 0xaca   :  { %1872 = vrot.lane.b32.xlu1 %v4406_v37, %s3800_s15 }
 0xacc   :  { %1838 = vrot.lane.b32.xlu0 %v4276_v50, %s3799_s5 }
 0xace   :  { %1844 = vrot.lane.b32.xlu1 %v4278_v6, %s3799_s5 }
 0xad0   :  { %1870 = vrot.lane.b32.xlu0 %v4408_v53, %s3800_s15 }
 0xad2   :  { %1876 = vrot.lane.b32.xlu1 %v4410_v35, %s3800_s15 }
 0xad4   :  { %1842 = vrot.lane.b32.xlu0 %v4280_v12, %s3799_s5 }
 0xad6   :  { %1848 = vrot.lane.b32.xlu1 %v4282_v39, %s3799_s5 }
 0xad8   :  { %1874 = vrot.lane.b32.xlu0 %v4412_v23, %s3800_s15 }
 0xada   :  { %1880 = vrot.lane.b32.xlu1 %v4414_v28, %s3800_s15 }
 0xadc   :  { %1846 = vrot.lane.b32.xlu0 %v4284_v51, %s3799_s5 }
 0xae0   :  { %1878 = vrot.lane.b32.xlu0 %v4416_v33, %s3800_s15 }
 0xb25   :  { %v1638_v29 = vpop.xlane.xlu0 %1637 }
 0xb26   :  { %v1635_v24 = vpop.xlane.xlu1 %1634 }
 0xb27   :  { %3762 = vrcp.f32 %v1635_v24 }
 0xb28   :  { %3764 = vrcp.f32 %v1638_v29 }
 0xb2a   :  { %v1641_v34 = vpop.xlane.xlu1 %1640 }
 0xb2b   :  { %3766 = vrcp.f32 %v1641_v34 }
 0xb2e   :  { %v1647_v6 = vpop.xlane.xlu1 %1646 }
 0xb2f   :  { %v1644_v47 = vpop.xlane.xlu0 %1643 }
 0xb30   :  { %3768 = vrcp.f32 %v1644_v47 }
 0xb31   :  { %v3763_v48 = vpop.eup %3762  ;;  %3770 = vrcp.f32 %v1647_v6 }
 0xb32   :  { %v1665_v54 = vmul.f32 %v3763_v48, %v4454_v49  ;;  %v3640_v39 = vpop.permute.xlu1 %3639  ;;  %v3765_v36 = vpop.eup %3764 }
 0xb33   :  { %v1650_v50 = vpop.xlane.xlu0 %1649  ;;  %v3642_v37 = vunpack.i.h.bf16 %v3640_v39  ;;  %v3641_v51 = vunpack.i.l.bf16 %v3640_v39  ;;  %v1666_v14 = vmul.f32 %v3765_v36, %v4452_v15 }
 0xb34   :  { %3170 = vmatprep.mubr.msk.f32.mxu1 %vm354_vm3, %v1665_v54  ;;  %3772 = vrcp.f32 %v1650_v50 }
 0xb35   :  { %v3428_v33 = vpack.c.bf16 %v3642_v37, %v3641_v51  ;;  %v3767_v30 = vpop.eup %3766 }
 0xb36   :  { %v3645_v23 = vpop.permute.xlu1 %3644  ;;  %v1667_v20 = vmul.f32 %v3767_v30, %v4460_v61  ;;  %v3440_v61 = vpack.c.bf16 %v1951_v27, %v1950_v2 }
 0xb37   :  { %v1656_v12 = vpop.xlane.xlu0 %1655  ;;  %v3647_v10 = vunpack.i.h.bf16 %v3645_v23  ;;  %v3646_v44 = vunpack.i.l.bf16 %v3645_v23 }
 0xb39   :  { %v3432_v17 = vpack.c.bf16 %v3647_v10, %v3646_v44 }
 0xb3a   :  { %v3769_v22 = vpop.eup %3768 }
 0xb3b   :  { %v1653_v38 = vpop.xlane.xlu0 %1652  ;;  %v3771_v5 = vpop.eup %3770  ;;  %v1668_v19 = vmul.f32 %v3769_v22, %v4466_v58 }
 0xb3c   :  { %3774 = vrcp.f32 %v1653_v38  ;;  %v1669_v49 = vmul.f32 %v3771_v5, %v4464_v52 }
 0xb3d   :  { %3776 = vrcp.f32 %v1656_v12 }
 0xb3e   :  { %v3773_v42 = vpop.eup %3772 }
 0xb3f   :  { %v3635_v32 = vpop.permute.xlu0 %3634  ;;  %v1670_v15 = vmul.f32 %v3773_v42, %v4472_v31  ;;  %v1835_v31 = vpop.permute.xlu1 %1834 }
 0xb40   :  { %v3637_v53 = vunpack.i.h.bf16 %v3635_v32  ;;  %v3636_v35 = vunpack.i.l.bf16 %v3635_v32  ;;  %v1922_v38 = vsel %vm216_vm1, %v4140_v56, %v1835_v31 }
 0xb42   :  { %v3424_v28 = vpack.c.bf16 %v3637_v53, %v3636_v35 }
 0xb43   :  { %v1837_v9 = vpop.permute.xlu1 %1836  ;;  %v1867_v4 = vpop.permute.xlu0 %1866 }
 0xb44   :  { %3425 = vmatprep.subr.bf16.mxu1 %v3424_v28  ;;  %v1923_v37 = vsel %vm216_vm1, %v4138_v55, %v1837_v9  ;;  %v1931_v51 = vsel %vm1930_vm4, %v1922_v38, %v1867_v4 }
 0xb45   :  { %3427 = vmatpush3.bf16.msra.mxu1 %v3424_v28 }
 0xb46   :  { %3429 = vmatprep.subr.bf16.mxu1 %v3428_v33  ;;  %v3775_v0 = vpop.eup %3774 }
 0xb47   :  { %v3777_v46 = vpop.eup %3776  ;;  %v1671_v8 = vmul.f32 %v3775_v0, %v4480_v41  ;;  %v1839_v43 = vpop.permute.xlu0 %1838 }
 0xb48   :  { %v1672_v13 = vmul.f32 %v3777_v46, %v4476_v7  ;;  %v1869_v7 = vpop.permute.xlu1 %1868 }
 0xb49   :  { %3431 = vmatpush3.bf16.msra.mxu1 %v3428_v33  ;;  %v1932_v35 = vsel %vm1930_vm4, %v1923_v37, %v1869_v7  ;;  %v1924_v33 = vsel %vm216_vm1, %v4144_v59, %v1839_v43 }
 0xb4a   :  { %3433 = vmatprep.subr.bf16.mxu1 %v3432_v17 }
 0xb4b   :  { %v1871_v29 = vpop.permute.xlu0 %1870 }
 0xb4c   :  { %v1841_v41 = vpop.permute.xlu1 %1840  ;;  %v1933_v10 = vsel %vm1930_vm4, %v1924_v33, %v1871_v29 }
 0xb4d   :  { %3435 = vmatpush3.bf16.msra.mxu1 %v3432_v17  ;;  %v1925_v55 = vsel %vm216_vm1, %v4142_v57, %v1841_v41 }
 0xb4e   :  { %3437 = vmatprep.subr.bf16.mxu1 %v3436_v25 }
 0xb4f   :  { %v1843_v47 = vpop.permute.xlu0 %1842 }
 0xb50   :  { %3171 = vmatmul.mubr.msk.f32.vlgmr.msra.gmra.mrb[24].mxu1 %vm354_vm3, %v1666_v14  ;;  %v1873_v24 = vpop.permute.xlu1 %1872  ;;  %v1926_v59 = vsel %vm216_vm1, %v4148_v63, %v1843_v47 }
 0xb51   :  { %3173 = vmatprep.mubr.msk.f32.mxu1 %vm354_vm3, %v1667_v20  ;;  %3439 = vmatpush3.bf16.msra.mxu1 %v3436_v25  ;;  %v1934_v17 = vsel %vm1930_vm4, %v1925_v55, %v1873_v24  ;;  %v2089_v55 = vld [vmem:[%s4715_s7] sm:$0xff] }
 0xb52   :  { %3441 = vmatprep.subr.bf16.mxu1 %v3440_v61 }
 0xb53   :  { %v1875_v54 = vpop.permute.xlu0 %1874 }
 0xb54   :  { %3174 = vmatmul.mubr.msk.f32.gmra.mrb[26].mxu1 %vm354_vm3, %v1668_v19  ;;  %v1845_v34 = vpop.permute.xlu1 %1844  ;;  %v1935_v22 = vsel %vm1930_vm4, %v1926_v59, %v1875_v54 }
 0xb55   :  { %3176 = vmatprep.mubr.msk.f32.mxu1 %vm354_vm3, %v1669_v49  ;;  %3443 = vmatpush3.bf16.msra.mxu1 %v3440_v61  ;;  %v1927_v57 = vsel %vm216_vm1, %v4146_v60, %v1845_v34 }
 0xb57   :  { %v1847_v6 = vpop.permute.xlu0 %1846 }
 0xb58   :  { %3177 = vmatmul.mubr.msk.f32.gmra.mrb[28].mxu1 %vm354_vm3, %v1670_v15  ;;  %v1877_v48 = vpop.permute.xlu1 %1876  ;;  %v1928_v63 = vsel %vm216_vm1, %v4152_v3, %v1847_v6  ;;  %v3802_v3 = vmov 0.0|0.0  }
 0xb59   :  { %3179 = vmatprep.mubr.msk.f32.mxu1 %vm354_vm3, %v1671_v8  ;;  %v1936_v5 = vsel %vm1930_vm4, %v1927_v57, %v1877_v48  ;;  %3444 = vmatprep.subr.bf16.mxu0 %v3802_v3 }
 0xb5a   :  { %3456 = vmatprep.subr.bf16.mxu1 %v3802_v3 }
 0xb5b   :  { %v1879_v39 = vpop.permute.xlu0 %1878 }
 0xb5c   :  { %3180 = vmatmul.mubr.msk.f32.gmra.mrb[30].mxu1 %vm354_vm3, %v1672_v13  ;;  %v1849_v50 = vpop.permute.xlu1 %1848  ;;  %v1937_v0 = vsel %vm1930_vm4, %v1928_v63, %v1879_v39  ;;  %v2263_v63 = vld [vmem:[%s4717_s9] sm:$0xf] }
 0xb5d   :  { %v1929_v60 = vsel %vm216_vm1, %v4150_v1, %v1849_v50  ;;  %v2721_v1 = vld [vmem:[%s4713_s4] ss:$0 sm:$0xff] }
 0xb60   :  { %v1881_v12 = vpop.permute.xlu1 %1880 }
 0xb61   :  { %v1938_v46 = vsel %vm1930_vm4, %v1929_v60, %v1881_v12 }
 0xc23   :  { %v3172_v62 = vpop.f32.mrb[24].mxu1 }
 0xc24   :  { %1900 = vrot.lane.b32.xlu1 %v3172_v62, %s3801_s22  ;;  %v1787_v40 = vpop.f32.mrb[25].mxu1 }
 0xc25   :  { %1898 = vrot.lane.b32.xlu0 %v1787_v40, %s3801_s22 }
 0xc27   :  { %v3175_v21 = vpop.f32.mrb[26].mxu1 }
 0xc28   :  { %1904 = vrot.lane.b32.xlu1 %v3175_v21, %s3801_s22  ;;  %v1797_v18 = vpop.f32.mrb[27].mxu1 }
 0xc29   :  { %1902 = vrot.lane.b32.xlu0 %v1797_v18, %s3801_s22 }
 0xc2b   :  { %v3178_v52 = vpop.f32.mrb[28].mxu1 }
 0xc2c   :  { %1908 = vrot.lane.b32.xlu1 %v3178_v52, %s3801_s22  ;;  %v1807_v58 = vpop.f32.mrb[29].mxu1 }
 0xc2d   :  { %1906 = vrot.lane.b32.xlu0 %v1807_v58, %s3801_s22 }
 0xc2f   :  { %v3181_v16 = vpop.f32.mrb[30].mxu1 }
 0xc30   :  { %1912 = vrot.lane.b32.xlu1 %v3181_v16, %s3801_s22  ;;  %v1817_v26 = vpop.f32.mrb[31].mxu1 }
 0xc31   :  { %1910 = vrot.lane.b32.xlu0 %v1817_v26, %s3801_s22 }
 0xc96   :  { %v1901_v32 = vpop.permute.xlu1 %1900 }
 0xc97   :  { %v1899_v53 = vpop.permute.xlu0 %1898  ;;  %v1941_v28 = vsel %vm1939_vm5, %v1932_v35, %v1901_v32 }
 0xc98   :  { %v1940_v23 = vsel %vm1939_vm5, %v1931_v51, %v1899_v53  ;;  %v2088_v51 = vld [vmem:[%s4714_s6] sm:$0xf] }
 0xc99   :  { %3190 = vmatprep.mubr.msk.f32.mxu1 %vm54_vm0, %v1940_v23 }
 0xc9a   :  { %3191 = vmatmul.mubr.msk.f32.vlgmr.msra.gmra.mrb[32].mxu1 %vm54_vm0, %v1941_v28  ;;  %v1905_v56 = vpop.permute.xlu1 %1904 }
 0xc9b   :  { %v1903_v44 = vpop.permute.xlu0 %1902  ;;  %v1943_v30 = vsel %vm1939_vm5, %v1934_v17, %v1905_v56 }
 0xc9c   :  { %v1942_v36 = vsel %vm1939_vm5, %v1933_v10, %v1903_v44  ;;  %v2091_v10 = vld [vmem:[%s4715_s7 + $0x10] sm:$0xff]  ;;  %v3805_v44 = vmov 0  }
 0xc9d   :  { %3193 = vmatprep.mubr.msk.f32.mxu1 %vm54_vm0, %v1942_v36  ;;  %3648 = vset.pattern.permute.xlu1 %v3805_v44 }
 0xc9e   :  { %3194 = vmatmul.mubr.msk.f32.gmra.mrb[34].mxu1 %vm54_vm0, %v1943_v30  ;;  %v1909_v14 = vpop.permute.xlu1 %1908  ;;  %3649 = vset.pattern.permute.xlu0 %v3805_v44 }
 0xc9f   :  { %v1907_v20 = vpop.permute.xlu0 %1906  ;;  %v1945_v42 = vsel %vm1939_vm5, %v1936_v5, %v1909_v14 }
 0xca0   :  { %v1944_v19 = vsel %vm1939_vm5, %v1935_v22, %v1907_v20  ;;  %v2261_v20 = vld [vmem:[%s4716_s8] sm:$0xf] }
 0xca1   :  { %3196 = vmatprep.mubr.msk.f32.mxu1 %vm54_vm0, %v1944_v19 }
 0xca2   :  { %3197 = vmatmul.mubr.msk.f32.gmra.mrb[36].mxu1 %vm54_vm0, %v1945_v42  ;;  %v1913_v49 = vpop.permute.xlu1 %1912  ;;  %v2090_v42 = vld [vmem:[%s4715_s7 + $0x8] sm:$0xff] }
 0xca3   :  { %v1911_v15 = vpop.permute.xlu0 %1910  ;;  %v1947_v13 = vsel %vm1939_vm5, %v1938_v46, %v1913_v49  ;;  %v2094_v46 = vld [vmem:[%s4715_s7 + $0x28] sm:$0xff] }
 0xca4   :  { %v1946_v8 = vsel %vm1939_vm5, %v1937_v0, %v1911_v15  ;;  %v2092_v0 = vld [vmem:[%s4715_s7 + $0x18] sm:$0xff]  ;;  %v2093_v15 = vld [vmem:[%s4715_s7 + $0x20] sm:$0xff] }
 0xca5   :  { %3199 = vmatprep.mubr.msk.f32.mxu1 %vm54_vm0, %v1946_v8  ;;  %v2095_v8 = vld [vmem:[%s4715_s7 + $0x30] sm:$0xff] }
 0xca6   :  { %3200 = vmatmul.mubr.msk.f32.gmra.mrb[38].mxu1 %vm54_vm0, %v1947_v13  ;;  %v2096_v13 = vld [vmem:[%s4715_s7 + $0x38] sm:$0xff] }
 0xca7   :  { %3237 = vmatprep.mubr.msk.f32.mxu1 %vm3803_vm6, %v3804_v11 }
 0xd6d   :  { %v3192_v45 = vpop.f32.mrb[32].mxu1 }
 0xd6e   :  { %v4577_v2 = vadd.f32 %v3192_v45, %v2721_v1  ;;  %v2049_v25 = vpop.f32.mrb[33].mxu1 }
 0xd6f   :  { %v4579_v27 = vadd.f32 %v2721_v1, %v2049_v25 }
 0xd70   :  { %v2171_v61 = vmul.f32 %v4577_v2, %v4577_v2 }
 0xd71   :  { %v3445_v62 = vpack.c.bf16 %v4577_v2, %v4579_v27  ;;  %v2170_v40 = vmul.f32 %v4579_v27, %v4579_v27  ;;  %v3195_v21 = vpop.f32.mrb[34].mxu1 }
 0xd72   :  { %v4587_v18 = vadd.f32 %v3195_v21, %v2721_v1  ;;  %v2059_v52 = vpop.f32.mrb[35].mxu1 }
 0xd73   :  { %v3457_v58 = vpack.c.bf16 %v2171_v61, %v2170_v40  ;;  %v4589_v16 = vadd.f32 %v2721_v1, %v2059_v52  ;;  %3446 = vmatpush3.bf16.msra.mxu0 %v3445_v62 }
 0xd74   :  { %v2173_v26 = vmul.f32 %v4587_v18, %v4587_v18  ;;  %3447 = vmatprep.subr.bf16.mxu0 %v3802_v3 }
 0xd75   :  { %v3448_v31 = vpack.c.bf16 %v4587_v18, %v4589_v16  ;;  %v2172_v9 = vmul.f32 %v4589_v16, %v4589_v16  ;;  %v3198_v7 = vpop.f32.mrb[36].mxu1  ;;  %3458 = vmatpush3.bf16.msra.mxu1 %v3457_v58 }
 0xd76   :  { %v4597_v4 = vadd.f32 %v3198_v7, %v2721_v1  ;;  %v2069_v41 = vpop.f32.mrb[37].mxu1  ;;  %3459 = vmatprep.subr.bf16.mxu1 %v3802_v3 }
 0xd77   :  { %v3460_v43 = vpack.c.bf16 %v2173_v26, %v2172_v9  ;;  %v4599_v24 = vadd.f32 %v2721_v1, %v2069_v41  ;;  %3449 = vmatpush3.bf16.msra.mxu0 %v3448_v31 }
 0xd78   :  { %v2175_v29 = vmul.f32 %v4597_v4, %v4597_v4  ;;  %3450 = vmatprep.subr.bf16.mxu0 %v3802_v3 }
 0xd79   :  { %v3451_v34 = vpack.c.bf16 %v4597_v4, %v4599_v24  ;;  %v2174_v47 = vmul.f32 %v4599_v24, %v4599_v24  ;;  %v3201_v48 = vpop.f32.mrb[38].mxu1  ;;  %3461 = vmatpush3.bf16.msra.mxu1 %v3460_v43 }
 0xd7a   :  { %v4607_v54 = vadd.f32 %v3201_v48, %v2721_v1  ;;  %v2079_v50 = vpop.f32.mrb[39].mxu1  ;;  %3462 = vmatprep.subr.bf16.mxu1 %v3802_v3 }
 0xd7b   :  { %v3463_v6 = vpack.c.bf16 %v2175_v29, %v2174_v47  ;;  %v4609_v12 = vadd.f32 %v2721_v1, %v2079_v50  ;;  %3452 = vmatpush3.bf16.msra.mxu0 %v3451_v34 }
 0xd7c   :  { %v2177_v39 = vmul.f32 %v4607_v54, %v4607_v54  ;;  %3453 = vmatprep.subr.bf16.mxu0 %v3802_v3 }
 0xd7d   :  { %v3454_v38 = vpack.c.bf16 %v4607_v54, %v4609_v12  ;;  %v2176_v32 = vmul.f32 %v4609_v12, %v4609_v12  ;;  %3464 = vmatpush3.bf16.msra.mxu1 %v3463_v6 }
 0xd7e   :  { %3465 = vmatprep.subr.bf16.mxu1 %v3802_v3 }
 0xd7f   :  { %v3466_v37 = vpack.c.bf16 %v2177_v39, %v2176_v32  ;;  %3455 = vmatpush3.bf16.msra.mxu0 %v3454_v38 }
 0xd81   :  { %3467 = vmatpush3.bf16.msra.mxu1 %v3466_v37 }
 0xd82   :  { %3219 = vmatmul.mubr.msk.f32.vlgmr.msra.gmra.mrb[40].mxu0 %vm354_vm3, %v2088_v51 }
 0xd83   :  { %3242 = vmatprep.mubr.msk.f32.mxu0 %vm2266_vm8, %v2089_v55 }
 0xd84   :  { %3238 = vmatmul.mubr.msk.f32.vlgmr.msra.gmra.mrb[40].mxu1 %vm354_vm3, %v2088_v51 }
 0xd85   :  { %3259 = vmatprep.mubr.msk.f32.mxu1 %vm2266_vm8, %v2091_v10 }
 0xe55   :  { %v2166_v53 = vpop.f32.mrb[40].mxu0 }
 0xe56   :  { %v2249_v35 = vsel %vm2248_vm7, %v2166_v53, 0.0  ;;  %v3220_v23 = vpop.f32.mrb[41].mxu0 }
 0xe57   :  { %v2244_v28 = vpop.f32.mrb[40].mxu1  ;;  %2250 = vadd.xlane.f32.xlu0 %v2249_v35 }
 0xe58   :  { %v2253_v33 = vsel %vm2248_vm7, %v2244_v28, 0.0  ;;  %v3239_v56 = vpop.f32.mrb[41].mxu1 }
 0xe59   :  { %2254 = vadd.xlane.f32.xlu1 %v2253_v33 }
 0xee4   :  { %v2251_v17 = vpop.xlane.xlu0 %2250 }
 0xee5   :  { %v2252_v36 = vmul.f32 0.001953125, %v2251_v17 }
 0xee6   :  { %v2255_v30 = vpop.xlane.xlu1 %2254 }
 0xee7   :  { %v2257_v59 = vmul.f32 %v2252_v36, %v2252_v36  ;;  %v2256_v14 = vmul.f32 0.001953125, %v2255_v30 }
 0xee9   :  { %v2258_v57 = vsub.f32 %v2256_v14, %v2257_v59 }
 0xeeb   :  { %v2259_v22 = vadd.f32 1e-05, %v2258_v57 }
 0xeed   :  { %3778 = vrsqrt.f32 %v2259_v22 }
 0xef7   :  { %v3779_v5 = vpop.eup %3778 }
 0xef8   :  { %v2262_v19 = vmul.f32 %v3779_v5, %v2261_v20 }
 0xefa   :  { %3240 = vmatprep.subr.msk.mxu0 %vm2291_vm9, %v2262_v19  ;;  %v2264_v49 = vmul.f32 %v2262_v19, %v2252_v36 }
 0xefb   :  { %3241 = vmatpush3.msk.msra.mxu0 %vm2291_vm9, %v2262_v19 }
 0xefc   :  { %3243 = vmatmul.mubr.msk.f32.vlgmr.msra.gmra.mrb[42].mxu0 %vm2266_vm8, %v2090_v42  ;;  %v2265_v60 = vsub.f32 %v2263_v63, %v2264_v49 }
 0xefd   :  { %3245 = vmatprep.mubr.msk.f32.mxu0 %vm2266_vm8, %v2091_v10 }
 0xefe   :  { %3254 = vmatprep.subr.msk.mxu0 %vm2291_vm9, %v2265_v60  ;;  %3468 = vmatprep.subr.msk.mxu1 %vm2291_vm9, %v2265_v60 }
 0xeff   :  { %3255 = vmatpush3.msk.msra.mxu0 %vm2291_vm9, %v2265_v60  ;;  %3469 = vmatpush3.msk.msra.mxu1 %vm2291_vm9, %v2265_v60 }
 0xf00   :  { %3246 = vmatmul.mubr.msk.f32.gmra.mrb[44].mxu0 %vm2266_vm8, %v2092_v0  ;;  %3260 = vmatmul.mubr.msk.f32.vlgmr.msra.gmra.mrb[42].mxu1 %vm2266_vm8, %v2092_v0 }
 0xf01   :  { %3248 = vmatprep.mubr.msk.f32.mxu0 %vm2266_vm8, %v2093_v15  ;;  %3262 = vmatprep.mubr.msk.f32.mxu1 %vm2266_vm8, %v2093_v15 }
 0xf04   :  { %3249 = vmatmul.mubr.msk.f32.gmra.mrb[46].mxu0 %vm2266_vm8, %v2094_v46  ;;  %3263 = vmatmul.mubr.msk.f32.gmra.mrb[44].mxu1 %vm2266_vm8, %v2094_v46 }
 0xf05   :  { %3251 = vmatprep.mubr.msk.f32.mxu0 %vm2266_vm8, %v2095_v8  ;;  %3265 = vmatprep.mubr.msk.f32.mxu1 %vm2266_vm8, %v2095_v8 }
 0xf08   :  { %3252 = vmatmul.mubr.msk.f32.gmra.mrb[48].mxu0 %vm2266_vm8, %v2096_v13  ;;  %3266 = vmatmul.mubr.msk.f32.gmra.mrb[46].mxu1 %vm2266_vm8, %v2096_v13 }
 0xf09   :  { %3256 = vmatprep.mubr.msk.f32.mxu0 %vm2266_vm8, %v2089_v55 }
 0xf0c   :  { %3257 = vmatmul.mubr.msk.f32.vlgmr.msra.gmra.mrb[50].mxu0 %vm2266_vm8, %v2090_v42 }
 0xfcf   :  { %v3244_v3 = vpop.f32.mrb[42].mxu0 }
 0xfd0   :  { %2515 = vperm.xlu1 %3648, %v3244_v3   ;;  %v2361_v11 = vpop.f32.mrb[43].mxu0 }
 0xfd1   :  { %2510 = vperm.xlu0 %3649, %v2361_v11  }
 0xfd3   :  { %v3247_v1 = vpop.f32.mrb[44].mxu0  ;;  %v3261_v45 = vpop.f32.mrb[42].mxu1 }
 0xfd4   :  { %2525 = vperm.xlu1 %3648, %v3247_v1   ;;  %v2371_v25 = vpop.f32.mrb[45].mxu0  ;;  %v2479_v61 = vpop.f32.mrb[43].mxu1 }
 0xfd5   :  { %2568 = vperm.xlu0 %3649, %v2479_v61  }
 0xfd7   :  { %v3250_v62 = vpop.f32.mrb[46].mxu0  ;;  %v3264_v40 = vpop.f32.mrb[44].mxu1 }
 0xfd8   :  { %2573 = vperm.xlu1 %3648, %v3261_v45   ;;  %v2489_v21 = vpop.f32.mrb[45].mxu1  ;;  %v2381_v52 = vpop.f32.mrb[47].mxu0 }
 0xfd9   :  { %2578 = vperm.xlu0 %3649, %v2489_v21  }
 0xfdb   :  { %v3253_v58 = vpop.f32.mrb[48].mxu0  ;;  %v3267_v26 = vpop.f32.mrb[46].mxu1 }
 0xfdc   :  { %2520 = vperm.xlu1 %3648, %v2371_v25   ;;  %v2391_v31 = vpop.f32.mrb[49].mxu0  ;;  %v2499_v9 = vpop.f32.mrb[47].mxu1 }
 0xfdf   :  { %v3258_v7 = vpop.f32.mrb[50].mxu0 }
 0xfe0   :  { %2535 = vperm.xlu1 %3648, %v3250_v62   ;;  %v2469_v41 = vpop.f32.mrb[51].mxu0 }
 0xfe1   :  { %2558 = vperm.xlu0 %3649, %v2469_v41  }
 0xfe4   :  { %2583 = vperm.xlu1 %3648, %v3264_v40  }
 0xfe5   :  { %2588 = vperm.xlu0 %3649, %v2499_v9  }
 0xfe8   :  { %2530 = vperm.xlu1 %3648, %v2381_v52  }
 0xfec   :  { %2545 = vperm.xlu1 %3648, %v3253_v58  }
 0xff0   :  { %2540 = vperm.xlu1 %3648, %v2391_v31  }
 0xff4   :  { %2563 = vperm.xlu1 %3648, %v3258_v7  }
 0xff8   :  { %2593 = vperm.xlu1 %3648, %v3267_v26  }
0x104f   :  { %v2516_v43 = vpop.permute.xlu1 %2515 }
0x1050   :  { %v2511_v29 = vpop.permute.xlu0 %2510  ;;  %v2549_v17 = vmul.f32 %v2516_v43, %v4577_v2 }
0x1051   :  { %v2548_v51 = vmul.f32 %v2511_v29, %v4579_v27 }
0x1053   :  { %v2526_v34 = vpop.permute.xlu1 %2525 }
0x1054   :  { %v2569_v47 = vpop.permute.xlu0 %2568  ;;  %v2551_v48 = vmul.f32 %v2526_v34, %v4587_v18 }
0x1057   :  { %v2574_v50 = vpop.permute.xlu1 %2573 }
0x1058   :  { %v2599_v6 = vadd.f32 %v2574_v50, %v2551_v48  ;;  %v2579_v39 = vpop.permute.xlu0 %2578 }
0x105a   :  { %2607 = vst.msk [vmem:[%s4718_s10 + $0x18] sm:$0xff] %vm54_vm0, %v2599_v6 }
0x105b   :  { %v2521_v38 = vpop.permute.xlu1 %2520 }
0x105c   :  { %v2550_v32 = vmul.f32 %v2521_v38, %v4589_v16 }
0x105e   :  { %v2598_v37 = vadd.f32 %v2569_v47, %v2550_v32 }
0x105f   :  { %v2536_v53 = vpop.permute.xlu1 %2535 }
0x1060   :  { %2606 = vst.msk [vmem:[%s4718_s10 + $0x10] sm:$0xff] %vm54_vm0, %v2598_v37  ;;  %v2559_v18 = vpop.permute.xlu0 %2558  ;;  %v2553_v23 = vmul.f32 %v2536_v53, %v4597_v4 }
0x1061   :  { %v2596_v35 = vadd.f32 %v2559_v18, %v2548_v51 }
0x1063   :  { %2604 = vst.msk [vmem:[%s4718_s10] sm:$0xff] %vm54_vm0, %v2596_v35  ;;  %v2584_v28 = vpop.permute.xlu1 %2583 }
0x1064   :  { %v2601_v16 = vadd.f32 %v2584_v28, %v2553_v23  ;;  %v2589_v44 = vpop.permute.xlu0 %2588 }
0x1066   :  { %2609 = vst.msk [vmem:[%s4718_s10 + $0x28] sm:$0xff] %vm54_vm0, %v2601_v16 }
0x1067   :  { %v2531_v27 = vpop.permute.xlu1 %2530 }
0x1068   :  { %v2552_v33 = vmul.f32 %v2531_v27, %v4599_v24 }
0x106a   :  { %v2600_v56 = vadd.f32 %v2579_v39, %v2552_v33 }
0x106b   :  { %v2546_v55 = vpop.permute.xlu1 %2545 }
0x106c   :  { %2608 = vst.msk [vmem:[%s4718_s10 + $0x20] sm:$0xff] %vm54_vm0, %v2600_v56  ;;  %v2555_v59 = vmul.f32 %v2546_v55, %v4607_v54 }
0x106f   :  { %v2541_v4 = vpop.permute.xlu1 %2540 }
0x1070   :  { %v2554_v10 = vmul.f32 %v2541_v4, %v4609_v12 }
0x1072   :  { %v2602_v36 = vadd.f32 %v2589_v44, %v2554_v10 }
0x1073   :  { %v2564_v30 = vpop.permute.xlu1 %2563 }
0x1074   :  { %2610 = vst.msk [vmem:[%s4718_s10 + $0x30] sm:$0xff] %vm54_vm0, %v2602_v36  ;;  %v2597_v24 = vadd.f32 %v2564_v30, %v2549_v17 }
0x1076   :  { %2605 = vst.msk [vmem:[%s4718_s10 + $0x8] sm:$0xff] %vm54_vm0, %v2597_v24 }
0x1077   :  { %v2594_v14 = vpop.permute.xlu1 %2593 }
0x1078   :  { %v2603_v12 = vadd.f32 %v2594_v14, %v2555_v59 }
0x107a   :  { %2611 = vst.msk [vmem:[%s4718_s10 + $0x38] sm:$0xff] %vm54_vm0, %v2603_v12 }

</bundles_post_ra>
